<compile_context>
chip_gen: v7x
topology: tpu7x:2x2x1
jax: 0.10.0
libtpu: 0.0.40
codegen_flags: <defaults>
</compile_context>

<pallas_src>
import math
import functools

import jax
import jax.numpy as jnp
from jax import lax
from jax.experimental import pallas as pl
from jax.experimental.pallas import tpu as pltpu

B_J0 = 0.1          # b_j0
BN_EPS = 1e-5
BN_GAMMA = 0.1      # every SeparatedBatchNorm1d weight is 0.1, bias 0


def _bn_rows(y, axis=0):
    """Training-mode batch norm over `axis` (biased var, gamma=0.1, beta=0).

    var = E[y^2] - E[y]^2 so the two reduces are independent and overlap."""
    mu = jnp.mean(y, axis=axis, keepdims=True)
    ms = jnp.mean(y * y, axis=axis, keepdims=True)
    var = ms - mu * mu
    return (BN_GAMMA * (y - mu)) * lax.rsqrt(var + BN_EPS)


def _snn_kernel(px_ref, h0_ref,
                w1r_ref, w2r_ref,
                w1tmd_ref, w1tmm_ref, b1tm_ref,
                w1tad_ref, w1tab_ref, b1ta_ref,
                w2x_ref,
                w2tmd_ref, w2tmm_ref, b2tm_ref,
                w2tad_ref, w2tab_ref, b2ta_ref,
                w3x_ref,
                w3tmd_ref, w3tmm_ref, b3tm_ref,
                om1_ref, os1_ref, ob1_ref, om2_ref, os2_ref, ob2_ref, om3_ref,
                m1_s, s1_s, b1_s, m2_s, s2_s, b2_s, m3_s,
                *, t_chunk, H, O):
    f32 = jnp.float32
    dot = functools.partial(jnp.dot, preferred_element_type=f32)

    # One-time state init from the packed h0 operand (first grid step only).
    @pl.when(pl.program_id(0) == 0)
    def _():
        h0 = h0_ref[...]
        m1_s[...] = h0[:, 0:H]
        s1_s[...] = h0[:, H:2 * H]
        b1_s[...] = h0[:, 2 * H:3 * H]
        m2_s[...] = h0[:, 3 * H:4 * H]
        s2_s[...] = h0[:, 4 * H:5 * H]
        b2_s[...] = h0[:, 5 * H:6 * H]
        m3_s[...] = h0[:, 6 * H:6 * H + O]

    def step(t, carry):
        m1, s1, b1, m2, s2, b2, m3 = carry

        # ---------------- layer 1 (adaptive spiking) ----------------
        r1 = _bn_rows(dot(s1, w1r_ref[...]))          # BN(spk_1_old @ W1r)
        dense1 = px_ref[t] + r1                       # BN(x_t @ W1x) precomputed
        tau_m1 = jax.nn.sigmoid(dot(dense1, w1tmd_ref[...])
                                + dot(m1, w1tmm_ref[...]) + b1tm_ref[...])
        tau_a1 = jax.nn.sigmoid(dot(dense1, w1tad_ref[...])
                                + dot(b1, w1tab_ref[...]) + b1ta_ref[...])
        nb1 = tau_a1 * b1 + (1.0 - tau_a1) * s1
        thr1 = B_J0 + 1.8 * nb1
        nm1 = m1 + (dense1 - m1) * tau_m1
        ns1 = jnp.where(nm1 - thr1 > 0.0, 1.0, 0.0).astype(f32)
        nm1 = (1.0 - ns1) * nm1

        # -------- layer 2 (recurrent term uses the OLD spk_1 = s1) --------
        r2 = _bn_rows(dot(s1, w2r_ref[...]))
        dense2 = _bn_rows(dot(ns1, w2x_ref[...])) + r2
        tau_m2 = jax.nn.sigmoid(dot(dense2, w2tmd_ref[...])
                                + dot(m2, w2tmm_ref[...]) + b2tm_ref[...])
        tau_a2 = jax.nn.sigmoid(dot(dense2, w2tad_ref[...])
                                + dot(b2, w2tab_ref[...]) + b2ta_ref[...])
        nb2 = tau_a2 * b2 + (1.0 - tau_a2) * s2
        thr2 = B_J0 + 1.8 * nb2
        nm2 = m2 + (dense2 - m2) * tau_m2
        ns2 = jnp.where(nm2 - thr2 > 0.0, 1.0, 0.0).astype(f32)
        nm2 = (1.0 - ns2) * nm2

        # ---------- output layer (leaky integrator, no spike) ----------
        dense3 = _bn_rows(dot(ns2, w3x_ref[...]))
        tau_m3 = jax.nn.sigmoid(dot(dense3, w3tmd_ref[...])
                                + dot(m3, w3tmm_ref[...]) + b3tm_ref[...])
        nm3 = (1.0 - tau_m3) * m3 + dense3 * tau_m3

        # Per-field stores (off the serial carry chain; no concat/lane shuffle).
        om1_ref[t] = nm1
        os1_ref[t] = ns1
        ob1_ref[t] = nb1
        om2_ref[t] = nm2
        os2_ref[t] = ns2
        ob2_ref[t] = nb2
        om3_ref[t] = nm3

        return (nm1, ns1, nb1, nm2, ns2, nb2, nm3)

    carry0 = (m1_s[...], s1_s[...], b1_s[...],
              m2_s[...], s2_s[...], b2_s[...], m3_s[...])
    final = lax.fori_loop(0, t_chunk, step, carry0)

    # Persist the recurrent state across grid iterations.
    m1_s[...] = final[0]
    s1_s[...] = final[1]
    b1_s[...] = final[2]
    m2_s[...] = final[3]
    s2_s[...] = final[4]
    b2_s[...] = final[5]
    m3_s[...] = final[6]


def snn_forward(x_tbd, h0, params):
    """x_tbd: (T, B, D_in) time-major; h0: 7-tuple (m1, s1, b1, m2, s2, b2, m3).

    Returns (log_out (T,B,O), final_state 7-tuple, hiddens 7-tuple of (T,B,.))."""
    T, B, D_in = x_tbd.shape
    H = h0[0].shape[1]
    O = h0[6].shape[1]

    a1m, a1a, a2m, a2a, a3 = (params["alphas"][i] for i in range(5))

    # Split each (2H, H) tau weight into its dense-rows / state-rows blocks and
    # fold the sigmoid_beta alpha in (sigmoid(a*(xW+b)) == sigmoid(x(aW)+a*b)).
    def split_tau(w, b, alpha, n):
        return alpha * w[:n], alpha * w[n:], alpha * b

    w1tmd, w1tmm, b1tm = split_tau(params["w1tm"], params["b1tm"], a1m, H)
    w1tad, w1tab, b1ta = split_tau(params["w1ta"], params["b1ta"], a1a, H)
    w2tmd, w2tmm, b2tm = split_tau(params["w2tm"], params["b2tm"], a2m, H)
    w2tad, w2tab, b2ta = split_tau(params["w2ta"], params["b2ta"], a2a, H)
    w3tmd, w3tmm, b3tm = split_tau(params["w3tm"], params["b3tm"], a3, O)

    # Non-recurrent input projection + per-timestep train-mode BN, hoisted out
    # of the sequential loop as one (T*B, D_in)@(D_in, H) matmul.  Linear
    # biases are cancelled exactly by the BN mean subtraction and are dropped.
    xw = jnp.dot(x_tbd.reshape(T * B, D_in), params["w1x"],
                 preferred_element_type=jnp.float32).reshape(T, B, H)
    px = _bn_rows(xw, axis=1)

    h0_packed = jnp.concatenate(h0, axis=1)                 # (B, 6H+O)

    # Time-chunked grid: largest chunk <= 32 that divides T.
    t_chunk = next(c for c in range(min(T, 32), 0, -1) if T % c == 0)
    n_chunks = T // t_chunk

    def whole(shape):
        return pl.BlockSpec(shape, lambda c, _n=len(shape): (0,) * _n)

    def chunk3(F):
        return pl.BlockSpec((t_chunk, B, F), lambda c: (c, 0, 0))

    weight_ops = (params["w1r"], params["w2r"],
                  w1tmd, w1tmm, b1tm, w1tad, w1tab, b1ta,
                  params["w2x"],
                  w2tmd, w2tmm, b2tm, w2tad, w2tab, b2ta,
                  params["w3x"],
                  w3tmd, w3tmm, b3tm)

    in_specs = ([chunk3(H), whole(h0_packed.shape)]
                + [whole(w.shape) for w in weight_ops])
    out_specs = tuple(chunk3(H) for _ in range(6)) + (chunk3(O),)
    out_shape = tuple(jax.ShapeDtypeStruct((T, B, H), jnp.float32) for _ in range(6)) \
        + (jax.ShapeDtypeStruct((T, B, O), jnp.float32),)
    scratch_shapes = [pltpu.VMEM((B, H), jnp.float32) for _ in range(6)] \
        + [pltpu.VMEM((B, O), jnp.float32)]

    flops = int(2 * T * B * (11 * H * H + H * O + 2 * O * O))
    transcendentals = int(T * (B * (4 * H + O) + 3 * H + O))
    bytes_accessed = int(4 * (T * B * H + T * B * (6 * H + O) + h0_packed.size
                              + sum(int(w.size) for w in weight_ops)))

    kern = functools.partial(_snn_kernel, t_chunk=t_chunk, H=H, O=O)
    outs = pl.pallas_call(
        kern,
        grid=(n_chunks,),
        in_specs=in_specs,
        out_specs=out_specs,
        out_shape=out_shape,
        scratch_shapes=scratch_shapes,
        compiler_params=pltpu.CompilerParams(
            dimension_semantics=("arbitrary",),
            vmem_limit_bytes=32 * 1024 * 1024),
        cost_estimate=pl.CostEstimate(
            flops=flops, transcendentals=transcendentals,
            bytes_accessed=bytes_accessed),
    )(px, h0_packed, *weight_ops)

    hiddens = tuple(outs)            # (mem1, spk1, b1, mem2, spk2, b2, mem3)
    final_state = tuple(h[-1] for h in hiddens)

    # log_softmax hoisted out of the recurrent loop (pure per-step post-pass).
    m3 = hiddens[6]
    z = m3 - jnp.max(m3, axis=-1, keepdims=True)
    log_out = z - jnp.log(jnp.sum(jnp.exp(z), axis=-1, keepdims=True))
    return log_out, final_state, hiddens


def _make_params(key, D_in, H, O):
    """Deterministic synthetic parameters (xavier-normal style), (in, out) layout."""
    ks = iter(jax.random.split(key, 16))

    def xavier(shape):
        fan_in, fan_out = shape
        std = math.sqrt(2.0 / (fan_in + fan_out))
        return (std * jax.random.normal(next(ks), shape)).astype(jnp.float32)

    zeros_row = lambda n: jnp.zeros((1, n), jnp.float32)

    # Linear biases b1x, b1r, b2x, b2r, b3x are omitted entirely: training-mode
    # batch norm cancels them exactly, so they never affect the output.
    return {
        "w1x": xavier((D_in, H)),
        "w1r": xavier((H, H)),        # orthogonal_ in PyTorch; xavier noise in demo
        "w1tm": xavier((2 * H, H)), "b1tm": zeros_row(H),
        "w1ta": xavier((2 * H, H)), "b1ta": zeros_row(H),
        "w2x": xavier((H, H)),
        "w2r": xavier((H, H)),
        "w2tm": xavier((2 * H, H)), "b2tm": zeros_row(H),
        "w2ta": xavier((2 * H, H)), "b2ta": zeros_row(H),
        "w3x": xavier((H, O)),
        "w3tm": xavier((2 * O, O)), "b3tm": zeros_row(O),
        # sigmoid_beta alphas: act1m, act1a, act2m, act2a, act3 (all init 1.5)
        "alphas": jnp.full((5,), 1.5, jnp.float32),
    }


if __name__ == "__main__":
    # Small, deterministic problem.  T must be > 99: that is the only
    # well-formed per-timestep branch of the reference forward pass.
    B, T, D_in, H, O = 8, 100, 16, 32, 10

    key = jax.random.PRNGKey(0)
    k_x, k_h, k_p = jax.random.split(key, 3)

    # PyTorch layout (batch, seq, dim) -> kernel layout (seq, batch, dim)
    x_bld = jax.random.normal(k_x, (B, T, D_in), dtype=jnp.float32)
    x_tbd = jnp.transpose(x_bld, (1, 0, 2))

    kh = jax.random.split(k_h, 2)
    h0 = (
        0.1 * jax.random.normal(kh[0], (B, H), dtype=jnp.float32),  # mem_1
        jnp.zeros((B, H), jnp.float32),                             # spk_1
        jnp.full((B, H), B_J0, jnp.float32),                        # b_1
        0.1 * jax.random.normal(kh[1], (B, H), dtype=jnp.float32),  # mem_2
        jnp.zeros((B, H), jnp.float32),                             # spk_2
        jnp.full((B, H), B_J0, jnp.float32),                        # b_2
        jnp.zeros((B, O), jnp.float32),                             # mem_3
    )

    params = _make_params(k_p, D_in, H, O)

    fwd = jax.jit(snn_forward)
    log_out, final_state, hiddens = fwd(x_tbd, h0, params)
    jax.block_until_ready(log_out)
    jax.block_until_ready(final_state)

    # firing-rate statistic (plain-JAX glue, matches self.fr semantics)
    fr = float((hiddens[1].mean() + hiddens[4].mean()) / 2.0)
    assert log_out.shape == (T, B, O) and final_state[0].shape == (B, H)
    assert jnp.isfinite(log_out).all() and 0.0 <= fr <= 1.0

    print("KERNEL_OK")
</pallas_src>

<mosaic_0001>
module attributes {stable_mosaic.version = 11 : i64} {
  func.func @_snn_kernel(%arg0: i32, %arg1: memref<25x8x32xf32, #tpu.memory_space<vmem>>, %arg2: memref<8x202xf32, #tpu.memory_space<vmem>>, %arg3: memref<32x32xf32, #tpu.memory_space<vmem>>, %arg4: memref<32x32xf32, #tpu.memory_space<vmem>>, %arg5: memref<32x32xf32, #tpu.memory_space<vmem>>, %arg6: memref<32x32xf32, #tpu.memory_space<vmem>>, %arg7: memref<1x32xf32, #tpu.memory_space<vmem>>, %arg8: memref<32x32xf32, #tpu.memory_space<vmem>>, %arg9: memref<32x32xf32, #tpu.memory_space<vmem>>, %arg10: memref<1x32xf32, #tpu.memory_space<vmem>>, %arg11: memref<32x32xf32, #tpu.memory_space<vmem>>, %arg12: memref<32x32xf32, #tpu.memory_space<vmem>>, %arg13: memref<32x32xf32, #tpu.memory_space<vmem>>, %arg14: memref<1x32xf32, #tpu.memory_space<vmem>>, %arg15: memref<32x32xf32, #tpu.memory_space<vmem>>, %arg16: memref<32x32xf32, #tpu.memory_space<vmem>>, %arg17: memref<1x32xf32, #tpu.memory_space<vmem>>, %arg18: memref<32x10xf32, #tpu.memory_space<vmem>>, %arg19: memref<10x10xf32, #tpu.memory_space<vmem>>, %arg20: memref<10x10xf32, #tpu.memory_space<vmem>>, %arg21: memref<1x10xf32, #tpu.memory_space<vmem>>, %arg22: memref<25x8x32xf32, #tpu.memory_space<vmem>>, %arg23: memref<25x8x32xf32, #tpu.memory_space<vmem>>, %arg24: memref<25x8x32xf32, #tpu.memory_space<vmem>>, %arg25: memref<25x8x32xf32, #tpu.memory_space<vmem>>, %arg26: memref<25x8x32xf32, #tpu.memory_space<vmem>>, %arg27: memref<25x8x32xf32, #tpu.memory_space<vmem>>, %arg28: memref<25x8x10xf32, #tpu.memory_space<vmem>>, %arg29: memref<8x32xf32, #tpu.memory_space<vmem>>, %arg30: memref<8x32xf32, #tpu.memory_space<vmem>>, %arg31: memref<8x32xf32, #tpu.memory_space<vmem>>, %arg32: memref<8x32xf32, #tpu.memory_space<vmem>>, %arg33: memref<8x32xf32, #tpu.memory_space<vmem>>, %arg34: memref<8x32xf32, #tpu.memory_space<vmem>>, %arg35: memref<8x10xf32, #tpu.memory_space<vmem>>) attributes {dimension_semantics = [#tpu.dimension_semantics<arbitrary>], iteration_bounds = array<i64: 4>, scalar_prefetch = 0 : i64, scratch_operands = 7 : i64, tpu.core_type = #tpu.core_type<tc>, window_params = [{transform_indices = @transform_0, window_bounds = array<i64: 25, 8, 32>}, {pipeline_mode = #tpu.pipeline_mode<synchronous>, transform_indices = @transform_1, window_bounds = array<i64: 8, 202>}, {pipeline_mode = #tpu.pipeline_mode<synchronous>, transform_indices = @transform_2, window_bounds = array<i64: 32, 32>}, {pipeline_mode = #tpu.pipeline_mode<synchronous>, transform_indices = @transform_3, window_bounds = array<i64: 32, 32>}, {pipeline_mode = #tpu.pipeline_mode<synchronous>, transform_indices = @transform_4, window_bounds = array<i64: 32, 32>}, {pipeline_mode = #tpu.pipeline_mode<synchronous>, transform_indices = @transform_5, window_bounds = array<i64: 32, 32>}, {pipeline_mode = #tpu.pipeline_mode<synchronous>, transform_indices = @transform_6, window_bounds = array<i64: 1, 32>}, {pipeline_mode = #tpu.pipeline_mode<synchronous>, transform_indices = @transform_7, window_bounds = array<i64: 32, 32>}, {pipeline_mode = #tpu.pipeline_mode<synchronous>, transform_indices = @transform_8, window_bounds = array<i64: 32, 32>}, {pipeline_mode = #tpu.pipeline_mode<synchronous>, transform_indices = @transform_9, window_bounds = array<i64: 1, 32>}, {pipeline_mode = #tpu.pipeline_mode<synchronous>, transform_indices = @transform_10, window_bounds = array<i64: 32, 32>}, {pipeline_mode = #tpu.pipeline_mode<synchronous>, transform_indices = @transform_11, window_bounds = array<i64: 32, 32>}, {pipeline_mode = #tpu.pipeline_mode<synchronous>, transform_indices = @transform_12, window_bounds = array<i64: 32, 32>}, {pipeline_mode = #tpu.pipeline_mode<synchronous>, transform_indices = @transform_13, window_bounds = array<i64: 1, 32>}, {pipeline_mode = #tpu.pipeline_mode<synchronous>, transform_indices = @transform_14, window_bounds = array<i64: 32, 32>}, {pipeline_mode = #tpu.pipeline_mode<synchronous>, transform_indices = @transform_15, window_bounds = array<i64: 32, 32>}, {pipeline_mode = #tpu.pipeline_mode<synchronous>, transform_indices = @transform_16, window_bounds = array<i64: 1, 32>}, {pipeline_mode = #tpu.pipeline_mode<synchronous>, transform_indices = @transform_17, window_bounds = array<i64: 32, 10>}, {pipeline_mode = #tpu.pipeline_mode<synchronous>, transform_indices = @transform_18, window_bounds = array<i64: 10, 10>}, {pipeline_mode = #tpu.pipeline_mode<synchronous>, transform_indices = @transform_19, window_bounds = array<i64: 10, 10>}, {pipeline_mode = #tpu.pipeline_mode<synchronous>, transform_indices = @transform_20, window_bounds = array<i64: 1, 10>}, {transform_indices = @transform_21, window_bounds = array<i64: 25, 8, 32>}, {transform_indices = @transform_22, window_bounds = array<i64: 25, 8, 32>}, {transform_indices = @transform_23, window_bounds = array<i64: 25, 8, 32>}, {transform_indices = @transform_24, window_bounds = array<i64: 25, 8, 32>}, {transform_indices = @transform_25, window_bounds = array<i64: 25, 8, 32>}, {transform_indices = @transform_26, window_bounds = array<i64: 25, 8, 32>}, {transform_indices = @transform_27, window_bounds = array<i64: 25, 8, 10>}]} {
    %c0_i32 = arith.constant 0 : i32
    %0 = arith.cmpi eq, %arg0, %c0_i32 : i32
    %1 = arith.extui %0 : i1 to i32
    %c0_i32_0 = arith.constant 0 : i32
    %2 = arith.cmpi ne, %1, %c0_i32_0 : i32
    scf.if %2 {
      %c0_30 = arith.constant 0 : index
      %c0_31 = arith.constant 0 : index
      %19 = vector.load %arg2[%c0_30, %c0_31] : memref<8x202xf32, #tpu.memory_space<vmem>>, vector<8x202xf32>
      %20 = vector.extract_strided_slice %19 {offsets = [0, 0], sizes = [8, 32], strides = [1, 1]} : vector<8x202xf32> to vector<8x32xf32>
      %c0_32 = arith.constant 0 : index
      %c0_33 = arith.constant 0 : index
      %21 = vector.load %arg29[%c0_32, %c0_33] : memref<8x32xf32, #tpu.memory_space<vmem>>, vector<8x32xf32>
      tpu.vector_store %arg29[%c0_32, %c0_33], %20 {strides = array<i32>} : memref<8x32xf32, #tpu.memory_space<vmem>>, vector<8x32xf32>,
      %22 = vector.extract_strided_slice %19 {offsets = [0, 32], sizes = [8, 32], strides = [1, 1]} : vector<8x202xf32> to vector<8x32xf32>
      %c0_34 = arith.constant 0 : index
      %c0_35 = arith.constant 0 : index
      %23 = vector.load %arg30[%c0_34, %c0_35] : memref<8x32xf32, #tpu.memory_space<vmem>>, vector<8x32xf32>
      tpu.vector_store %arg30[%c0_34, %c0_35], %22 {strides = array<i32>} : memref<8x32xf32, #tpu.memory_space<vmem>>, vector<8x32xf32>,
      %24 = vector.extract_strided_slice %19 {offsets = [0, 64], sizes = [8, 32], strides = [1, 1]} : vector<8x202xf32> to vector<8x32xf32>
      %c0_36 = arith.constant 0 : index
      %c0_37 = arith.constant 0 : index
      %25 = vector.load %arg31[%c0_36, %c0_37] : memref<8x32xf32, #tpu.memory_space<vmem>>, vector<8x32xf32>
      tpu.vector_store %arg31[%c0_36, %c0_37], %24 {strides = array<i32>} : memref<8x32xf32, #tpu.memory_space<vmem>>, vector<8x32xf32>,
      %26 = vector.extract_strided_slice %19 {offsets = [0, 96], sizes = [8, 32], strides = [1, 1]} : vector<8x202xf32> to vector<8x32xf32>
      %c0_38 = arith.constant 0 : index
      %c0_39 = arith.constant 0 : index
      %27 = vector.load %arg32[%c0_38, %c0_39] : memref<8x32xf32, #tpu.memory_space<vmem>>, vector<8x32xf32>
      tpu.vector_store %arg32[%c0_38, %c0_39], %26 {strides = array<i32>} : memref<8x32xf32, #tpu.memory_space<vmem>>, vector<8x32xf32>,
      %28 = vector.extract_strided_slice %19 {offsets = [0, 128], sizes = [8, 32], strides = [1, 1]} : vector<8x202xf32> to vector<8x32xf32>
      %c0_40 = arith.constant 0 : index
      %c0_41 = arith.constant 0 : index
      %29 = vector.load %arg33[%c0_40, %c0_41] : memref<8x32xf32, #tpu.memory_space<vmem>>, vector<8x32xf32>
      tpu.vector_store %arg33[%c0_40, %c0_41], %28 {strides = array<i32>} : memref<8x32xf32, #tpu.memory_space<vmem>>, vector<8x32xf32>,
      %30 = vector.extract_strided_slice %19 {offsets = [0, 160], sizes = [8, 32], strides = [1, 1]} : vector<8x202xf32> to vector<8x32xf32>
      %c0_42 = arith.constant 0 : index
      %c0_43 = arith.constant 0 : index
      %31 = vector.load %arg34[%c0_42, %c0_43] : memref<8x32xf32, #tpu.memory_space<vmem>>, vector<8x32xf32>
      tpu.vector_store %arg34[%c0_42, %c0_43], %30 {strides = array<i32>} : memref<8x32xf32, #tpu.memory_space<vmem>>, vector<8x32xf32>,
      %32 = vector.extract_strided_slice %19 {offsets = [0, 192], sizes = [8, 10], strides = [1, 1]} : vector<8x202xf32> to vector<8x10xf32>
      %c0_44 = arith.constant 0 : index
      %c0_45 = arith.constant 0 : index
      %33 = vector.load %arg35[%c0_44, %c0_45] : memref<8x10xf32, #tpu.memory_space<vmem>>, vector<8x10xf32>
      tpu.vector_store %arg35[%c0_44, %c0_45], %32 {strides = array<i32>} : memref<8x10xf32, #tpu.memory_space<vmem>>, vector<8x10xf32>,
    } else {
    }
    %c0 = arith.constant 0 : index
    %c0_1 = arith.constant 0 : index
    %3 = vector.load %arg29[%c0, %c0_1] : memref<8x32xf32, #tpu.memory_space<vmem>>, vector<8x32xf32>
    %c0_2 = arith.constant 0 : index
    %c0_3 = arith.constant 0 : index
    %4 = vector.load %arg30[%c0_2, %c0_3] : memref<8x32xf32, #tpu.memory_space<vmem>>, vector<8x32xf32>
    %c0_4 = arith.constant 0 : index
    %c0_5 = arith.constant 0 : index
    %5 = vector.load %arg31[%c0_4, %c0_5] : memref<8x32xf32, #tpu.memory_space<vmem>>, vector<8x32xf32>
    %c0_6 = arith.constant 0 : index
    %c0_7 = arith.constant 0 : index
    %6 = vector.load %arg32[%c0_6, %c0_7] : memref<8x32xf32, #tpu.memory_space<vmem>>, vector<8x32xf32>
    %c0_8 = arith.constant 0 : index
    %c0_9 = arith.constant 0 : index
    %7 = vector.load %arg33[%c0_8, %c0_9] : memref<8x32xf32, #tpu.memory_space<vmem>>, vector<8x32xf32>
    %c0_10 = arith.constant 0 : index
    %c0_11 = arith.constant 0 : index
    %8 = vector.load %arg34[%c0_10, %c0_11] : memref<8x32xf32, #tpu.memory_space<vmem>>, vector<8x32xf32>
    %c0_12 = arith.constant 0 : index
    %c0_13 = arith.constant 0 : index
    %9 = vector.load %arg35[%c0_12, %c0_13] : memref<8x10xf32, #tpu.memory_space<vmem>>, vector<8x10xf32>
    %c0_i32_14 = arith.constant 0 : i32
    %c25_i32 = arith.constant 25 : i32
    %10 = arith.addi %c0_i32_14, %c25_i32 : i32
    %c1_i32 = arith.constant 1 : i32
    %11:7 = scf.for %arg36 = %c0_i32_14 to %10 step %c1_i32 iter_args(%arg37 = %3, %arg38 = %4, %arg39 = %5, %arg40 = %6, %arg41 = %7, %arg42 = %8, %arg43 = %9) -> (vector<8x32xf32>, vector<8x32xf32>, vector<8x32xf32>, vector<8x32xf32>, vector<8x32xf32>, vector<8x32xf32>, vector<8x10xf32>)  : i32 {
      %c0_30 = arith.constant 0 : index
      %c0_31 = arith.constant 0 : index
      %19 = vector.load %arg3[%c0_30, %c0_31] : memref<32x32xf32, #tpu.memory_space<vmem>>, vector<32x32xf32>
      %cst = arith.constant dense<0.000000e+00> : vector<8x32xf32>
      %20 = tpu.matmul %arg38, %19, %cst {dimension_numbers = #tpu.dot_dimension_numbers<[1], [0], [0], [1], [0, 0, 1, 1], [], []>} : vector<8x32xf32>, vector<32x32xf32>, vector<8x32xf32> -> vector<8x32xf32>
      %cst_32 = arith.constant dense<0.000000e+00> : vector<32xf32>
      %21 = vector.multi_reduction <add>, %20, %cst_32 [0] : vector<8x32xf32> to vector<32xf32>
      %22 = vector.shape_cast %21 : vector<32xf32> to vector<1x32xf32>
      %cst_33 = arith.constant 8.000000e+00 : f32
      %23 = vector.broadcast %cst_33 : f32 to vector<1x32xf32>
      %24 = arith.divf %22, %23 : vector<1x32xf32>
      %25 = arith.mulf %20, %20 : vector<8x32xf32>
      %cst_34 = arith.constant dense<0.000000e+00> : vector<32xf32>
      %26 = vector.multi_reduction <add>, %25, %cst_34 [0] : vector<8x32xf32> to vector<32xf32>
      %27 = vector.shape_cast %26 : vector<32xf32> to vector<1x32xf32>
      %cst_35 = arith.constant 8.000000e+00 : f32
      %28 = vector.broadcast %cst_35 : f32 to vector<1x32xf32>
      %29 = arith.divf %27, %28 : vector<1x32xf32>
      %30 = arith.mulf %24, %24 : vector<1x32xf32>
      %31 = arith.subf %29, %30 : vector<1x32xf32>
      %32 = vector.broadcast %24 : vector<1x32xf32> to vector<8x32xf32>
      %33 = arith.subf %20, %32 : vector<8x32xf32>
      %cst_36 = arith.constant 1.000000e-01 : f32
      %34 = vector.broadcast %cst_36 : f32 to vector<8x32xf32>
      %35 = arith.mulf %34, %33 : vector<8x32xf32>
      %cst_37 = arith.constant 9.99999974E-6 : f32
      %36 = vector.broadcast %cst_37 : f32 to vector<1x32xf32>
      %37 = arith.addf %31, %36 : vector<1x32xf32>
      %38 = math.rsqrt %37 : vector<1x32xf32>
      %39 = vector.broadcast %38 : vector<1x32xf32> to vector<8x32xf32>
      %40 = arith.mulf %35, %39 : vector<8x32xf32>
      %41 = arith.index_cast %arg36 : i32 to index
      %c0_38 = arith.constant 0 : index
      %c0_39 = arith.constant 0 : index
      %42 = vector.load %arg1[%41, %c0_38, %c0_39] : memref<25x8x32xf32, #tpu.memory_space<vmem>>, vector<1x8x32xf32>
      %43 = vector.shape_cast %42 : vector<1x8x32xf32> to vector<8x32xf32>
      %44 = arith.addf %43, %40 : vector<8x32xf32>
      %c0_40 = arith.constant 0 : index
      %c0_41 = arith.constant 0 : index
      %45 = vector.load %arg5[%c0_40, %c0_41] : memref<32x32xf32, #tpu.memory_space<vmem>>, vector<32x32xf32>
      %cst_42 = arith.constant dense<0.000000e+00> : vector<8x32xf32>
      %46 = tpu.matmul %44, %45, %cst_42 {dimension_numbers = #tpu.dot_dimension_numbers<[1], [0], [0], [1], [0, 0, 1, 1], [], []>} : vector<8x32xf32>, vector<32x32xf32>, vector<8x32xf32> -> vector<8x32xf32>
      %c0_43 = arith.constant 0 : index
      %c0_44 = arith.constant 0 : index
      %47 = vector.load %arg6[%c0_43, %c0_44] : memref<32x32xf32, #tpu.memory_space<vmem>>, vector<32x32xf32>
      %cst_45 = arith.constant dense<0.000000e+00> : vector<8x32xf32>
      %48 = tpu.matmul %arg37, %47, %cst_45 {dimension_numbers = #tpu.dot_dimension_numbers<[1], [0], [0], [1], [0, 0, 1, 1], [], []>} : vector<8x32xf32>, vector<32x32xf32>, vector<8x32xf32> -> vector<8x32xf32>
      %49 = arith.addf %46, %48 : vector<8x32xf32>
      %c0_46 = arith.constant 0 : index
      %c0_47 = arith.constant 0 : index
      %50 = vector.load %arg7[%c0_46, %c0_47] : memref<1x32xf32, #tpu.memory_space<vmem>>, vector<1x32xf32>
      %51 = vector.broadcast %50 : vector<1x32xf32> to vector<8x32xf32>
      %52 = arith.addf %49, %51 : vector<8x32xf32>
      %53 = arith.negf %52 : vector<8x32xf32>
      %54 = math.exp %53 : vector<8x32xf32>
      %cst_48 = arith.constant 1.000000e+00 : f32
      %55 = vector.broadcast %cst_48 : f32 to vector<8x32xf32>
      %56 = arith.addf %55, %54 : vector<8x32xf32>
      %57 = arith.divf %55, %56 : vector<8x32xf32>
      %c0_49 = arith.constant 0 : index
      %c0_50 = arith.constant 0 : index
      %58 = vector.load %arg8[%c0_49, %c0_50] : memref<32x32xf32, #tpu.memory_space<vmem>>, vector<32x32xf32>
      %cst_51 = arith.constant dense<0.000000e+00> : vector<8x32xf32>
      %59 = tpu.matmul %44, %58, %cst_51 {dimension_numbers = #tpu.dot_dimension_numbers<[1], [0], [0], [1], [0, 0, 1, 1], [], []>} : vector<8x32xf32>, vector<32x32xf32>, vector<8x32xf32> -> vector<8x32xf32>
      %c0_52 = arith.constant 0 : index
      %c0_53 = arith.constant 0 : index
      %60 = vector.load %arg9[%c0_52, %c0_53] : memref<32x32xf32, #tpu.memory_space<vmem>>, vector<32x32xf32>
      %cst_54 = arith.constant dense<0.000000e+00> : vector<8x32xf32>
      %61 = tpu.matmul %arg39, %60, %cst_54 {dimension_numbers = #tpu.dot_dimension_numbers<[1], [0], [0], [1], [0, 0, 1, 1], [], []>} : vector<8x32xf32>, vector<32x32xf32>, vector<8x32xf32> -> vector<8x32xf32>
      %62 = arith.addf %59, %61 : vector<8x32xf32>
      %c0_55 = arith.constant 0 : index
      %c0_56 = arith.constant 0 : index
      %63 = vector.load %arg10[%c0_55, %c0_56] : memref<1x32xf32, #tpu.memory_space<vmem>>, vector<1x32xf32>
      %64 = vector.broadcast %63 : vector<1x32xf32> to vector<8x32xf32>
      %65 = arith.addf %62, %64 : vector<8x32xf32>
      %66 = arith.negf %65 : vector<8x32xf32>
      %67 = math.exp %66 : vector<8x32xf32>
      %cst_57 = arith.constant 1.000000e+00 : f32
      %68 = vector.broadcast %cst_57 : f32 to vector<8x32xf32>
      %69 = arith.addf %68, %67 : vector<8x32xf32>
      %70 = arith.divf %68, %69 : vector<8x32xf32>
      %71 = arith.mulf %70, %arg39 : vector<8x32xf32>
      %cst_58 = arith.constant 1.000000e+00 : f32
      %72 = vector.broadcast %cst_58 : f32 to vector<8x32xf32>
      %73 = arith.subf %72, %70 : vector<8x32xf32>
      %74 = arith.mulf %73, %arg38 : vector<8x32xf32>
      %75 = arith.addf %71, %74 : vector<8x32xf32>
      %cst_59 = arith.constant 1.800000e+00 : f32
      %76 = vector.broadcast %cst_59 : f32 to vector<8x32xf32>
      %77 = arith.mulf %76, %75 : vector<8x32xf32>
      %cst_60 = arith.constant 1.000000e-01 : f32
      %78 = vector.broadcast %cst_60 : f32 to vector<8x32xf32>
      %79 = arith.addf %78, %77 : vector<8x32xf32>
      %80 = arith.subf %44, %arg37 : vector<8x32xf32>
      %81 = arith.mulf %80, %57 : vector<8x32xf32>
      %82 = arith.addf %arg37, %81 : vector<8x32xf32>
      %83 = arith.subf %82, %79 : vector<8x32xf32>
      %cst_61 = arith.constant 0.000000e+00 : f32
      %84 = vector.broadcast %cst_61 : f32 to vector<8x32xf32>
      %85 = arith.cmpf ogt, %83, %84 : vector<8x32xf32>
      %cst_62 = arith.constant 1.000000e+00 : f32
      %cst_63 = arith.constant 0.000000e+00 : f32
      %86 = vector.broadcast %cst_62 : f32 to vector<8x32xf32>
      %87 = vector.broadcast %cst_63 : f32 to vector<8x32xf32>
      %88 = arith.select %85, %86, %87 : vector<8x32xi1>, vector<8x32xf32>
      %cst_64 = arith.constant 1.000000e+00 : f32
      %89 = vector.broadcast %cst_64 : f32 to vector<8x32xf32>
      %90 = arith.subf %89, %88 : vector<8x32xf32>
      %91 = arith.mulf %90, %82 : vector<8x32xf32>
      %c0_65 = arith.constant 0 : index
      %c0_66 = arith.constant 0 : index
      %92 = vector.load %arg4[%c0_65, %c0_66] : memref<32x32xf32, #tpu.memory_space<vmem>>, vector<32x32xf32>
      %cst_67 = arith.constant dense<0.000000e+00> : vector<8x32xf32>
      %93 = tpu.matmul %arg38, %92, %cst_67 {dimension_numbers = #tpu.dot_dimension_numbers<[1], [0], [0], [1], [0, 0, 1, 1], [], []>} : vector<8x32xf32>, vector<32x32xf32>, vector<8x32xf32> -> vector<8x32xf32>
      %cst_68 = arith.constant dense<0.000000e+00> : vector<32xf32>
      %94 = vector.multi_reduction <add>, %93, %cst_68 [0] : vector<8x32xf32> to vector<32xf32>
      %95 = vector.shape_cast %94 : vector<32xf32> to vector<1x32xf32>
      %cst_69 = arith.constant 8.000000e+00 : f32
      %96 = vector.broadcast %cst_69 : f32 to vector<1x32xf32>
      %97 = arith.divf %95, %96 : vector<1x32xf32>
      %98 = arith.mulf %93, %93 : vector<8x32xf32>
      %cst_70 = arith.constant dense<0.000000e+00> : vector<32xf32>
      %99 = vector.multi_reduction <add>, %98, %cst_70 [0] : vector<8x32xf32> to vector<32xf32>
      %100 = vector.shape_cast %99 : vector<32xf32> to vector<1x32xf32>
      %cst_71 = arith.constant 8.000000e+00 : f32
      %101 = vector.broadcast %cst_71 : f32 to vector<1x32xf32>
      %102 = arith.divf %100, %101 : vector<1x32xf32>
      %103 = arith.mulf %97, %97 : vector<1x32xf32>
      %104 = arith.subf %102, %103 : vector<1x32xf32>
      %105 = vector.broadcast %97 : vector<1x32xf32> to vector<8x32xf32>
      %106 = arith.subf %93, %105 : vector<8x32xf32>
      %cst_72 = arith.constant 1.000000e-01 : f32
      %107 = vector.broadcast %cst_72 : f32 to vector<8x32xf32>
      %108 = arith.mulf %107, %106 : vector<8x32xf32>
      %cst_73 = arith.constant 9.99999974E-6 : f32
      %109 = vector.broadcast %cst_73 : f32 to vector<1x32xf32>
      %110 = arith.addf %104, %109 : vector<1x32xf32>
      %111 = math.rsqrt %110 : vector<1x32xf32>
      %112 = vector.broadcast %111 : vector<1x32xf32> to vector<8x32xf32>
      %113 = arith.mulf %108, %112 : vector<8x32xf32>
      %c0_74 = arith.constant 0 : index
      %c0_75 = arith.constant 0 : index
      %114 = vector.load %arg11[%c0_74, %c0_75] : memref<32x32xf32, #tpu.memory_space<vmem>>, vector<32x32xf32>
      %cst_76 = arith.constant dense<0.000000e+00> : vector<8x32xf32>
      %115 = tpu.matmul %88, %114, %cst_76 {dimension_numbers = #tpu.dot_dimension_numbers<[1], [0], [0], [1], [0, 0, 1, 1], [], []>} : vector<8x32xf32>, vector<32x32xf32>, vector<8x32xf32> -> vector<8x32xf32>
      %cst_77 = arith.constant dense<0.000000e+00> : vector<32xf32>
      %116 = vector.multi_reduction <add>, %115, %cst_77 [0] : vector<8x32xf32> to vector<32xf32>
      %117 = vector.shape_cast %116 : vector<32xf32> to vector<1x32xf32>
      %cst_78 = arith.constant 8.000000e+00 : f32
      %118 = vector.broadcast %cst_78 : f32 to vector<1x32xf32>
      %119 = arith.divf %117, %118 : vector<1x32xf32>
      %120 = arith.mulf %115, %115 : vector<8x32xf32>
      %cst_79 = arith.constant dense<0.000000e+00> : vector<32xf32>
      %121 = vector.multi_reduction <add>, %120, %cst_79 [0] : vector<8x32xf32> to vector<32xf32>
      %122 = vector.shape_cast %121 : vector<32xf32> to vector<1x32xf32>
      %cst_80 = arith.constant 8.000000e+00 : f32
      %123 = vector.broadcast %cst_80 : f32 to vector<1x32xf32>
      %124 = arith.divf %122, %123 : vector<1x32xf32>
      %125 = arith.mulf %119, %119 : vector<1x32xf32>
      %126 = arith.subf %124, %125 : vector<1x32xf32>
      %127 = vector.broadcast %119 : vector<1x32xf32> to vector<8x32xf32>
      %128 = arith.subf %115, %127 : vector<8x32xf32>
      %cst_81 = arith.constant 1.000000e-01 : f32
      %129 = vector.broadcast %cst_81 : f32 to vector<8x32xf32>
      %130 = arith.mulf %129, %128 : vector<8x32xf32>
      %cst_82 = arith.constant 9.99999974E-6 : f32
      %131 = vector.broadcast %cst_82 : f32 to vector<1x32xf32>
      %132 = arith.addf %126, %131 : vector<1x32xf32>
      %133 = math.rsqrt %132 : vector<1x32xf32>
      %134 = vector.broadcast %133 : vector<1x32xf32> to vector<8x32xf32>
      %135 = arith.mulf %130, %134 : vector<8x32xf32>
      %136 = arith.addf %135, %113 : vector<8x32xf32>
      %c0_83 = arith.constant 0 : index
      %c0_84 = arith.constant 0 : index
      %137 = vector.load %arg12[%c0_83, %c0_84] : memref<32x32xf32, #tpu.memory_space<vmem>>, vector<32x32xf32>
      %cst_85 = arith.constant dense<0.000000e+00> : vector<8x32xf32>
      %138 = tpu.matmul %136, %137, %cst_85 {dimension_numbers = #tpu.dot_dimension_numbers<[1], [0], [0], [1], [0, 0, 1, 1], [], []>} : vector<8x32xf32>, vector<32x32xf32>, vector<8x32xf32> -> vector<8x32xf32>
      %c0_86 = arith.constant 0 : index
      %c0_87 = arith.constant 0 : index
      %139 = vector.load %arg13[%c0_86, %c0_87] : memref<32x32xf32, #tpu.memory_space<vmem>>, vector<32x32xf32>
      %cst_88 = arith.constant dense<0.000000e+00> : vector<8x32xf32>
      %140 = tpu.matmul %arg40, %139, %cst_88 {dimension_numbers = #tpu.dot_dimension_numbers<[1], [0], [0], [1], [0, 0, 1, 1], [], []>} : vector<8x32xf32>, vector<32x32xf32>, vector<8x32xf32> -> vector<8x32xf32>
      %141 = arith.addf %138, %140 : vector<8x32xf32>
      %c0_89 = arith.constant 0 : index
      %c0_90 = arith.constant 0 : index
      %142 = vector.load %arg14[%c0_89, %c0_90] : memref<1x32xf32, #tpu.memory_space<vmem>>, vector<1x32xf32>
      %143 = vector.broadcast %142 : vector<1x32xf32> to vector<8x32xf32>
      %144 = arith.addf %141, %143 : vector<8x32xf32>
      %145 = arith.negf %144 : vector<8x32xf32>
      %146 = math.exp %145 : vector<8x32xf32>
      %cst_91 = arith.constant 1.000000e+00 : f32
      %147 = vector.broadcast %cst_91 : f32 to vector<8x32xf32>
      %148 = arith.addf %147, %146 : vector<8x32xf32>
      %149 = arith.divf %147, %148 : vector<8x32xf32>
      %c0_92 = arith.constant 0 : index
      %c0_93 = arith.constant 0 : index
      %150 = vector.load %arg15[%c0_92, %c0_93] : memref<32x32xf32, #tpu.memory_space<vmem>>, vector<32x32xf32>
      %cst_94 = arith.constant dense<0.000000e+00> : vector<8x32xf32>
      %151 = tpu.matmul %136, %150, %cst_94 {dimension_numbers = #tpu.dot_dimension_numbers<[1], [0], [0], [1], [0, 0, 1, 1], [], []>} : vector<8x32xf32>, vector<32x32xf32>, vector<8x32xf32> -> vector<8x32xf32>
      %c0_95 = arith.constant 0 : index
      %c0_96 = arith.constant 0 : index
      %152 = vector.load %arg16[%c0_95, %c0_96] : memref<32x32xf32, #tpu.memory_space<vmem>>, vector<32x32xf32>
      %cst_97 = arith.constant dense<0.000000e+00> : vector<8x32xf32>
      %153 = tpu.matmul %arg42, %152, %cst_97 {dimension_numbers = #tpu.dot_dimension_numbers<[1], [0], [0], [1], [0, 0, 1, 1], [], []>} : vector<8x32xf32>, vector<32x32xf32>, vector<8x32xf32> -> vector<8x32xf32>
      %154 = arith.addf %151, %153 : vector<8x32xf32>
      %c0_98 = arith.constant 0 : index
      %c0_99 = arith.constant 0 : index
      %155 = vector.load %arg17[%c0_98, %c0_99] : memref<1x32xf32, #tpu.memory_space<vmem>>, vector<1x32xf32>
      %156 = vector.broadcast %155 : vector<1x32xf32> to vector<8x32xf32>
      %157 = arith.addf %154, %156 : vector<8x32xf32>
      %158 = arith.negf %157 : vector<8x32xf32>
      %159 = math.exp %158 : vector<8x32xf32>
      %cst_100 = arith.constant 1.000000e+00 : f32
      %160 = vector.broadcast %cst_100 : f32 to vector<8x32xf32>
      %161 = arith.addf %160, %159 : vector<8x32xf32>
      %162 = arith.divf %160, %161 : vector<8x32xf32>
      %163 = arith.mulf %162, %arg42 : vector<8x32xf32>
      %cst_101 = arith.constant 1.000000e+00 : f32
      %164 = vector.broadcast %cst_101 : f32 to vector<8x32xf32>
      %165 = arith.subf %164, %162 : vector<8x32xf32>
      %166 = arith.mulf %165, %arg41 : vector<8x32xf32>
      %167 = arith.addf %163, %166 : vector<8x32xf32>
      %cst_102 = arith.constant 1.800000e+00 : f32
      %168 = vector.broadcast %cst_102 : f32 to vector<8x32xf32>
      %169 = arith.mulf %168, %167 : vector<8x32xf32>
      %cst_103 = arith.constant 1.000000e-01 : f32
      %170 = vector.broadcast %cst_103 : f32 to vector<8x32xf32>
      %171 = arith.addf %170, %169 : vector<8x32xf32>
      %172 = arith.subf %136, %arg40 : vector<8x32xf32>
      %173 = arith.mulf %172, %149 : vector<8x32xf32>
      %174 = arith.addf %arg40, %173 : vector<8x32xf32>
      %175 = arith.subf %174, %171 : vector<8x32xf32>
      %cst_104 = arith.constant 0.000000e+00 : f32
      %176 = vector.broadcast %cst_104 : f32 to vector<8x32xf32>
      %177 = arith.cmpf ogt, %175, %176 : vector<8x32xf32>
      %cst_105 = arith.constant 1.000000e+00 : f32
      %cst_106 = arith.constant 0.000000e+00 : f32
      %178 = vector.broadcast %cst_105 : f32 to vector<8x32xf32>
      %179 = vector.broadcast %cst_106 : f32 to vector<8x32xf32>
      %180 = arith.select %177, %178, %179 : vector<8x32xi1>, vector<8x32xf32>
      %cst_107 = arith.constant 1.000000e+00 : f32
      %181 = vector.broadcast %cst_107 : f32 to vector<8x32xf32>
      %182 = arith.subf %181, %180 : vector<8x32xf32>
      %183 = arith.mulf %182, %174 : vector<8x32xf32>
      %c0_108 = arith.constant 0 : index
      %c0_109 = arith.constant 0 : index
      %184 = vector.load %arg18[%c0_108, %c0_109] : memref<32x10xf32, #tpu.memory_space<vmem>>, vector<32x10xf32>
      %cst_110 = arith.constant dense<0.000000e+00> : vector<8x10xf32>
      %185 = tpu.matmul %180, %184, %cst_110 {dimension_numbers = #tpu.dot_dimension_numbers<[1], [0], [0], [1], [0, 0, 1, 1], [], []>} : vector<8x32xf32>, vector<32x10xf32>, vector<8x10xf32> -> vector<8x10xf32>
      %cst_111 = arith.constant dense<0.000000e+00> : vector<10xf32>
      %186 = vector.multi_reduction <add>, %185, %cst_111 [0] : vector<8x10xf32> to vector<10xf32>
      %187 = vector.shape_cast %186 : vector<10xf32> to vector<1x10xf32>
      %cst_112 = arith.constant 8.000000e+00 : f32
      %188 = vector.broadcast %cst_112 : f32 to vector<1x10xf32>
      %189 = arith.divf %187, %188 : vector<1x10xf32>
      %190 = arith.mulf %185, %185 : vector<8x10xf32>
      %cst_113 = arith.constant dense<0.000000e+00> : vector<10xf32>
      %191 = vector.multi_reduction <add>, %190, %cst_113 [0] : vector<8x10xf32> to vector<10xf32>
      %192 = vector.shape_cast %191 : vector<10xf32> to vector<1x10xf32>
      %cst_114 = arith.constant 8.000000e+00 : f32
      %193 = vector.broadcast %cst_114 : f32 to vector<1x10xf32>
      %194 = arith.divf %192, %193 : vector<1x10xf32>
      %195 = arith.mulf %189, %189 : vector<1x10xf32>
      %196 = arith.subf %194, %195 : vector<1x10xf32>
      %197 = vector.broadcast %189 : vector<1x10xf32> to vector<8x10xf32>
      %198 = arith.subf %185, %197 : vector<8x10xf32>
      %cst_115 = arith.constant 1.000000e-01 : f32
      %199 = vector.broadcast %cst_115 : f32 to vector<8x10xf32>
      %200 = arith.mulf %199, %198 : vector<8x10xf32>
      %cst_116 = arith.constant 9.99999974E-6 : f32
      %201 = vector.broadcast %cst_116 : f32 to vector<1x10xf32>
      %202 = arith.addf %196, %201 : vector<1x10xf32>
      %203 = math.rsqrt %202 : vector<1x10xf32>
      %204 = vector.broadcast %203 : vector<1x10xf32> to vector<8x10xf32>
      %205 = arith.mulf %200, %204 : vector<8x10xf32>
      %c0_117 = arith.constant 0 : index
      %c0_118 = arith.constant 0 : index
      %206 = vector.load %arg19[%c0_117, %c0_118] : memref<10x10xf32, #tpu.memory_space<vmem>>, vector<10x10xf32>
      %cst_119 = arith.constant dense<0.000000e+00> : vector<8x10xf32>
      %207 = tpu.matmul %205, %206, %cst_119 {dimension_numbers = #tpu.dot_dimension_numbers<[1], [0], [0], [1], [0, 0, 1, 1], [], []>} : vector<8x10xf32>, vector<10x10xf32>, vector<8x10xf32> -> vector<8x10xf32>
      %c0_120 = arith.constant 0 : index
      %c0_121 = arith.constant 0 : index
      %208 = vector.load %arg20[%c0_120, %c0_121] : memref<10x10xf32, #tpu.memory_space<vmem>>, vector<10x10xf32>
      %cst_122 = arith.constant dense<0.000000e+00> : vector<8x10xf32>
      %209 = tpu.matmul %arg43, %208, %cst_122 {dimension_numbers = #tpu.dot_dimension_numbers<[1], [0], [0], [1], [0, 0, 1, 1], [], []>} : vector<8x10xf32>, vector<10x10xf32>, vector<8x10xf32> -> vector<8x10xf32>
      %210 = arith.addf %207, %209 : vector<8x10xf32>
      %c0_123 = arith.constant 0 : index
      %c0_124 = arith.constant 0 : index
      %211 = vector.load %arg21[%c0_123, %c0_124] : memref<1x10xf32, #tpu.memory_space<vmem>>, vector<1x10xf32>
      %212 = vector.broadcast %211 : vector<1x10xf32> to vector<8x10xf32>
      %213 = arith.addf %210, %212 : vector<8x10xf32>
      %214 = arith.negf %213 : vector<8x10xf32>
      %215 = math.exp %214 : vector<8x10xf32>
      %cst_125 = arith.constant 1.000000e+00 : f32
      %216 = vector.broadcast %cst_125 : f32 to vector<8x10xf32>
      %217 = arith.addf %216, %215 : vector<8x10xf32>
      %218 = arith.divf %216, %217 : vector<8x10xf32>
      %cst_126 = arith.constant 1.000000e+00 : f32
      %219 = vector.broadcast %cst_126 : f32 to vector<8x10xf32>
      %220 = arith.subf %219, %218 : vector<8x10xf32>
      %221 = arith.mulf %220, %arg43 : vector<8x10xf32>
      %222 = arith.mulf %205, %218 : vector<8x10xf32>
      %223 = arith.addf %221, %222 : vector<8x10xf32>
      %224 = arith.index_cast %arg36 : i32 to index
      %c0_127 = arith.constant 0 : index
      %c0_128 = arith.constant 0 : index
      %225 = vector.load %arg22[%224, %c0_127, %c0_128] : memref<25x8x32xf32, #tpu.memory_space<vmem>>, vector<1x8x32xf32>
      %226 = vector.shape_cast %225 : vector<1x8x32xf32> to vector<8x32xf32>
      %227 = vector.shape_cast %91 : vector<8x32xf32> to vector<1x8x32xf32>
      tpu.vector_store %arg22[%224, %c0_127, %c0_128], %227 {strides = array<i32>} : memref<25x8x32xf32, #tpu.memory_space<vmem>>, vector<1x8x32xf32>,
      %228 = arith.index_cast %arg36 : i32 to index
      %c0_129 = arith.constant 0 : index
      %c0_130 = arith.constant 0 : index
      %229 = vector.load %arg23[%228, %c0_129, %c0_130] : memref<25x8x32xf32, #tpu.memory_space<vmem>>, vector<1x8x32xf32>
      %230 = vector.shape_cast %229 : vector<1x8x32xf32> to vector<8x32xf32>
      %231 = vector.shape_cast %88 : vector<8x32xf32> to vector<1x8x32xf32>
      tpu.vector_store %arg23[%228, %c0_129, %c0_130], %231 {strides = array<i32>} : memref<25x8x32xf32, #tpu.memory_space<vmem>>, vector<1x8x32xf32>,
      %232 = arith.index_cast %arg36 : i32 to index
      %c0_131 = arith.constant 0 : index
      %c0_132 = arith.constant 0 : index
      %233 = vector.load %arg24[%232, %c0_131, %c0_132] : memref<25x8x32xf32, #tpu.memory_space<vmem>>, vector<1x8x32xf32>
      %234 = vector.shape_cast %233 : vector<1x8x32xf32> to vector<8x32xf32>
      %235 = vector.shape_cast %75 : vector<8x32xf32> to vector<1x8x32xf32>
      tpu.vector_store %arg24[%232, %c0_131, %c0_132], %235 {strides = array<i32>} : memref<25x8x32xf32, #tpu.memory_space<vmem>>, vector<1x8x32xf32>,
      %236 = arith.index_cast %arg36 : i32 to index
      %c0_133 = arith.constant 0 : index
      %c0_134 = arith.constant 0 : index
      %237 = vector.load %arg25[%236, %c0_133, %c0_134] : memref<25x8x32xf32, #tpu.memory_space<vmem>>, vector<1x8x32xf32>
      %238 = vector.shape_cast %237 : vector<1x8x32xf32> to vector<8x32xf32>
      %239 = vector.shape_cast %183 : vector<8x32xf32> to vector<1x8x32xf32>
      tpu.vector_store %arg25[%236, %c0_133, %c0_134], %239 {strides = array<i32>} : memref<25x8x32xf32, #tpu.memory_space<vmem>>, vector<1x8x32xf32>,
      %240 = arith.index_cast %arg36 : i32 to index
      %c0_135 = arith.constant 0 : index
      %c0_136 = arith.constant 0 : index
      %241 = vector.load %arg26[%240, %c0_135, %c0_136] : memref<25x8x32xf32, #tpu.memory_space<vmem>>, vector<1x8x32xf32>
      %242 = vector.shape_cast %241 : vector<1x8x32xf32> to vector<8x32xf32>
      %243 = vector.shape_cast %180 : vector<8x32xf32> to vector<1x8x32xf32>
      tpu.vector_store %arg26[%240, %c0_135, %c0_136], %243 {strides = array<i32>} : memref<25x8x32xf32, #tpu.memory_space<vmem>>, vector<1x8x32xf32>,
      %244 = arith.index_cast %arg36 : i32 to index
      %c0_137 = arith.constant 0 : index
      %c0_138 = arith.constant 0 : index
      %245 = vector.load %arg27[%244, %c0_137, %c0_138] : memref<25x8x32xf32, #tpu.memory_space<vmem>>, vector<1x8x32xf32>
      %246 = vector.shape_cast %245 : vector<1x8x32xf32> to vector<8x32xf32>
      %247 = vector.shape_cast %167 : vector<8x32xf32> to vector<1x8x32xf32>
      tpu.vector_store %arg27[%244, %c0_137, %c0_138], %247 {strides = array<i32>} : memref<25x8x32xf32, #tpu.memory_space<vmem>>, vector<1x8x32xf32>,
      %248 = arith.index_cast %arg36 : i32 to index
      %c0_139 = arith.constant 0 : index
      %c0_140 = arith.constant 0 : index
      %249 = vector.load %arg28[%248, %c0_139, %c0_140] : memref<25x8x10xf32, #tpu.memory_space<vmem>>, vector<1x8x10xf32>
      %250 = vector.shape_cast %249 : vector<1x8x10xf32> to vector<8x10xf32>
      %251 = vector.shape_cast %223 : vector<8x10xf32> to vector<1x8x10xf32>
      tpu.vector_store %arg28[%248, %c0_139, %c0_140], %251 {strides = array<i32>} : memref<25x8x10xf32, #tpu.memory_space<vmem>>, vector<1x8x10xf32>,
      scf.yield %91, %88, %75, %183, %180, %167, %223 : vector<8x32xf32>, vector<8x32xf32>, vector<8x32xf32>, vector<8x32xf32>, vector<8x32xf32>, vector<8x32xf32>, vector<8x10xf32>
    }
    %c25_i32_15 = arith.constant 25 : i32
    %c0_16 = arith.constant 0 : index
    %c0_17 = arith.constant 0 : index
    %12 = vector.load %arg29[%c0_16, %c0_17] : memref<8x32xf32, #tpu.memory_space<vmem>>, vector<8x32xf32>
    tpu.vector_store %arg29[%c0_16, %c0_17], %11#0 {strides = array<i32>} : memref<8x32xf32, #tpu.memory_space<vmem>>, vector<8x32xf32>,
    %c0_18 = arith.constant 0 : index
    %c0_19 = arith.constant 0 : index
    %13 = vector.load %arg30[%c0_18, %c0_19] : memref<8x32xf32, #tpu.memory_space<vmem>>, vector<8x32xf32>
    tpu.vector_store %arg30[%c0_18, %c0_19], %11#1 {strides = array<i32>} : memref<8x32xf32, #tpu.memory_space<vmem>>, vector<8x32xf32>,
    %c0_20 = arith.constant 0 : index
    %c0_21 = arith.constant 0 : index
    %14 = vector.load %arg31[%c0_20, %c0_21] : memref<8x32xf32, #tpu.memory_space<vmem>>, vector<8x32xf32>
    tpu.vector_store %arg31[%c0_20, %c0_21], %11#2 {strides = array<i32>} : memref<8x32xf32, #tpu.memory_space<vmem>>, vector<8x32xf32>,
    %c0_22 = arith.constant 0 : index
    %c0_23 = arith.constant 0 : index
    %15 = vector.load %arg32[%c0_22, %c0_23] : memref<8x32xf32, #tpu.memory_space<vmem>>, vector<8x32xf32>
    tpu.vector_store %arg32[%c0_22, %c0_23], %11#3 {strides = array<i32>} : memref<8x32xf32, #tpu.memory_space<vmem>>, vector<8x32xf32>,
    %c0_24 = arith.constant 0 : index
    %c0_25 = arith.constant 0 : index
    %16 = vector.load %arg33[%c0_24, %c0_25] : memref<8x32xf32, #tpu.memory_space<vmem>>, vector<8x32xf32>
    tpu.vector_store %arg33[%c0_24, %c0_25], %11#4 {strides = array<i32>} : memref<8x32xf32, #tpu.memory_space<vmem>>, vector<8x32xf32>,
    %c0_26 = arith.constant 0 : index
    %c0_27 = arith.constant 0 : index
    %17 = vector.load %arg34[%c0_26, %c0_27] : memref<8x32xf32, #tpu.memory_space<vmem>>, vector<8x32xf32>
    tpu.vector_store %arg34[%c0_26, %c0_27], %11#5 {strides = array<i32>} : memref<8x32xf32, #tpu.memory_space<vmem>>, vector<8x32xf32>,
    %c0_28 = arith.constant 0 : index
    %c0_29 = arith.constant 0 : index
    %18 = vector.load %arg35[%c0_28, %c0_29] : memref<8x10xf32, #tpu.memory_space<vmem>>, vector<8x10xf32>
    tpu.vector_store %arg35[%c0_28, %c0_29], %11#6 {strides = array<i32>} : memref<8x10xf32, #tpu.memory_space<vmem>>, vector<8x10xf32>,
    return
  }
  func.func @transform_0(%arg0: i32) -> (i32, i32, i32) {
    %c0_i32 = arith.constant 0 : i32
    %c0_i32_0 = arith.constant 0 : i32
    %c0_i32_1 = arith.constant 0 : i32
    return %arg0, %c0_i32, %c0_i32_0 : i32, i32, i32
  }
  func.func @transform_1(%arg0: i32) -> (i32, i32) {
    %c0_i32 = arith.constant 0 : i32
    %c0_i32_0 = arith.constant 0 : i32
    %c0_i32_1 = arith.constant 0 : i32
    return %c0_i32, %c0_i32_0 : i32, i32
  }
  func.func @transform_2(%arg0: i32) -> (i32, i32) {
    %c0_i32 = arith.constant 0 : i32
    %c0_i32_0 = arith.constant 0 : i32
    %c0_i32_1 = arith.constant 0 : i32
    return %c0_i32, %c0_i32_0 : i32, i32
  }
  func.func @transform_3(%arg0: i32) -> (i32, i32) {
    %c0_i32 = arith.constant 0 : i32
    %c0_i32_0 = arith.constant 0 : i32
    %c0_i32_1 = arith.constant 0 : i32
    return %c0_i32, %c0_i32_0 : i32, i32
  }
  func.func @transform_4(%arg0: i32) -> (i32, i32) {
    %c0_i32 = arith.constant 0 : i32
    %c0_i32_0 = arith.constant 0 : i32
    %c0_i32_1 = arith.constant 0 : i32
    return %c0_i32, %c0_i32_0 : i32, i32
  }
  func.func @transform_5(%arg0: i32) -> (i32, i32) {
    %c0_i32 = arith.constant 0 : i32
    %c0_i32_0 = arith.constant 0 : i32
    %c0_i32_1 = arith.constant 0 : i32
    return %c0_i32, %c0_i32_0 : i32, i32
  }
  func.func @transform_6(%arg0: i32) -> (i32, i32) {
    %c0_i32 = arith.constant 0 : i32
    %c0_i32_0 = arith.constant 0 : i32
    %c0_i32_1 = arith.constant 0 : i32
    return %c0_i32, %c0_i32_0 : i32, i32
  }
  func.func @transform_7(%arg0: i32) -> (i32, i32) {
    %c0_i32 = arith.constant 0 : i32
    %c0_i32_0 = arith.constant 0 : i32
    %c0_i32_1 = arith.constant 0 : i32
    return %c0_i32, %c0_i32_0 : i32, i32
  }
  func.func @transform_8(%arg0: i32) -> (i32, i32) {
    %c0_i32 = arith.constant 0 : i32
    %c0_i32_0 = arith.constant 0 : i32
    %c0_i32_1 = arith.constant 0 : i32
    return %c0_i32, %c0_i32_0 : i32, i32
  }
  func.func @transform_9(%arg0: i32) -> (i32, i32) {
    %c0_i32 = arith.constant 0 : i32
    %c0_i32_0 = arith.constant 0 : i32
    %c0_i32_1 = arith.constant 0 : i32
    return %c0_i32, %c0_i32_0 : i32, i32
  }
  func.func @transform_10(%arg0: i32) -> (i32, i32) {
    %c0_i32 = arith.constant 0 : i32
    %c0_i32_0 = arith.constant 0 : i32
    %c0_i32_1 = arith.constant 0 : i32
    return %c0_i32, %c0_i32_0 : i32, i32
  }
  func.func @transform_11(%arg0: i32) -> (i32, i32) {
    %c0_i32 = arith.constant 0 : i32
    %c0_i32_0 = arith.constant 0 : i32
    %c0_i32_1 = arith.constant 0 : i32
    return %c0_i32, %c0_i32_0 : i32, i32
  }
  func.func @transform_12(%arg0: i32) -> (i32, i32) {
    %c0_i32 = arith.constant 0 : i32
    %c0_i32_0 = arith.constant 0 : i32
    %c0_i32_1 = arith.constant 0 : i32
    return %c0_i32, %c0_i32_0 : i32, i32
  }
  func.func @transform_13(%arg0: i32) -> (i32, i32) {
    %c0_i32 = arith.constant 0 : i32
    %c0_i32_0 = arith.constant 0 : i32
    %c0_i32_1 = arith.constant 0 : i32
    return %c0_i32, %c0_i32_0 : i32, i32
  }
  func.func @transform_14(%arg0: i32) -> (i32, i32) {
    %c0_i32 = arith.constant 0 : i32
    %c0_i32_0 = arith.constant 0 : i32
    %c0_i32_1 = arith.constant 0 : i32
    return %c0_i32, %c0_i32_0 : i32, i32
  }
  func.func @transform_15(%arg0: i32) -> (i32, i32) {
    %c0_i32 = arith.constant 0 : i32
    %c0_i32_0 = arith.constant 0 : i32
    %c0_i32_1 = arith.constant 0 : i32
    return %c0_i32, %c0_i32_0 : i32, i32
  }
  func.func @transform_16(%arg0: i32) -> (i32, i32) {
    %c0_i32 = arith.constant 0 : i32
    %c0_i32_0 = arith.constant 0 : i32
    %c0_i32_1 = arith.constant 0 : i32
    return %c0_i32, %c0_i32_0 : i32, i32
  }
  func.func @transform_17(%arg0: i32) -> (i32, i32) {
    %c0_i32 = arith.constant 0 : i32
    %c0_i32_0 = arith.constant 0 : i32
    %c0_i32_1 = arith.constant 0 : i32
    return %c0_i32, %c0_i32_0 : i32, i32
  }
  func.func @transform_18(%arg0: i32) -> (i32, i32) {
    %c0_i32 = arith.constant 0 : i32
    %c0_i32_0 = arith.constant 0 : i32
    %c0_i32_1 = arith.constant 0 : i32
    return %c0_i32, %c0_i32_0 : i32, i32
  }
  func.func @transform_19(%arg0: i32) -> (i32, i32) {
    %c0_i32 = arith.constant 0 : i32
    %c0_i32_0 = arith.constant 0 : i32
    %c0_i32_1 = arith.constant 0 : i32
    return %c0_i32, %c0_i32_0 : i32, i32
  }
  func.func @transform_20(%arg0: i32) -> (i32, i32) {
    %c0_i32 = arith.constant 0 : i32
    %c0_i32_0 = arith.constant 0 : i32
    %c0_i32_1 = arith.constant 0 : i32
    return %c0_i32, %c0_i32_0 : i32, i32
  }
  func.func @transform_21(%arg0: i32) -> (i32, i32, i32) {
    %c0_i32 = arith.constant 0 : i32
    %c0_i32_0 = arith.constant 0 : i32
    %c0_i32_1 = arith.constant 0 : i32
    return %arg0, %c0_i32, %c0_i32_0 : i32, i32, i32
  }
  func.func @transform_22(%arg0: i32) -> (i32, i32, i32) {
    %c0_i32 = arith.constant 0 : i32
    %c0_i32_0 = arith.constant 0 : i32
    %c0_i32_1 = arith.constant 0 : i32
    return %arg0, %c0_i32, %c0_i32_0 : i32, i32, i32
  }
  func.func @transform_23(%arg0: i32) -> (i32, i32, i32) {
    %c0_i32 = arith.constant 0 : i32
    %c0_i32_0 = arith.constant 0 : i32
    %c0_i32_1 = arith.constant 0 : i32
    return %arg0, %c0_i32, %c0_i32_0 : i32, i32, i32
  }
  func.func @transform_24(%arg0: i32) -> (i32, i32, i32) {
    %c0_i32 = arith.constant 0 : i32
    %c0_i32_0 = arith.constant 0 : i32
    %c0_i32_1 = arith.constant 0 : i32
    return %arg0, %c0_i32, %c0_i32_0 : i32, i32, i32
  }
  func.func @transform_25(%arg0: i32) -> (i32, i32, i32) {
    %c0_i32 = arith.constant 0 : i32
    %c0_i32_0 = arith.constant 0 : i32
    %c0_i32_1 = arith.constant 0 : i32
    return %arg0, %c0_i32, %c0_i32_0 : i32, i32, i32
  }
  func.func @transform_26(%arg0: i32) -> (i32, i32, i32) {
    %c0_i32 = arith.constant 0 : i32
    %c0_i32_0 = arith.constant 0 : i32
    %c0_i32_1 = arith.constant 0 : i32
    return %arg0, %c0_i32, %c0_i32_0 : i32, i32, i32
  }
  func.func @transform_27(%arg0: i32) -> (i32, i32, i32) {
    %c0_i32 = arith.constant 0 : i32
    %c0_i32_0 = arith.constant 0 : i32
    %c0_i32_1 = arith.constant 0 : i32
    return %arg0, %c0_i32, %c0_i32_0 : i32, i32, i32
  }
}

</mosaic_0001>

<bundles_post_ra>
// kernel: snn_forward.1
= control target key start
LH: loop header
LB: loop body
LE: loop exit
PB: predicated region body
PF: predicated region fallthrough
CT: control target
= control target key end

     0   :  { %s3703_s0 = inlined_call_operand.vmem [shape: f32[100,8,32], index: 0, kind: input, shape index: {}]   ;;  %s3704_s1 = inlined_call_operand.vmem [shape: f32[8,202], index: 1, kind: input, shape index: {}]   ;;  %s3705_s2 = inlined_call_operand.vmem [shape: f32[32,32], index: 2, kind: input, shape index: {}]   ;;  %s3706_s3 = inlined_call_operand.vmem [shape: f32[32,32], index: 3, kind: input, shape index: {}]   ;;  %s3707_s4 = inlined_call_operand.vmem [shape: f32[32,32], index: 4, kind: input, shape index: {}]   ;;  %s3708_s5 = inlined_call_operand.vmem [shape: f32[32,32], index: 5, kind: input, shape index: {}]   ;;  %s3709_s6 = inlined_call_operand.vmem [shape: f32[1,32], index: 6, kind: input, shape index: {}]   ;;  %s3710_s7 = inlined_call_operand.vmem [shape: f32[32,32], index: 7, kind: input, shape index: {}]   ;;  %s3711_s8 = inlined_call_operand.vmem [shape: f32[32,32], index: 8, kind: input, shape index: {}]   ;;  %s3712_s9 = inlined_call_operand.vmem [shape: f32[1,32], index: 9, kind: input, shape index: {}]   ;;  %s3713_s10 = inlined_call_operand.vmem [shape: f32[32,32], index: 10, kind: input, shape index: {}]   ;;  %s3714_s11 = inlined_call_operand.vmem [shape: f32[32,32], index: 11, kind: input, shape index: {}]   ;;  %s3715_s12 = inlined_call_operand.vmem [shape: f32[32,32], index: 12, kind: input, shape index: {}]   ;;  %s3716_s13 = inlined_call_operand.vmem [shape: f32[1,32], index: 13, kind: input, shape index: {}]   ;;  %s3717_s14 = inlined_call_operand.vmem [shape: f32[32,32], index: 14, kind: input, shape index: {}]   ;;  %s3718_s15 = inlined_call_operand.vmem [shape: f32[32,32], index: 15, kind: input, shape index: {}]   ;;  %s3719_s16 = inlined_call_operand.vmem [shape: f32[1,32], index: 16, kind: input, shape index: {}]   ;;  %s3720_s17 = inlined_call_operand.vmem [shape: f32[32,10], index: 17, kind: input, shape index: {}]   ;;  %s3721_s18 = inlined_call_operand.vmem [shape: f32[10,10], index: 18, kind: input, shape index: {}]   ;;  %s3722_s19 = inlined_call_operand.vmem [shape: f32[10,10], index: 19, kind: input, shape index: {}]   ;;  %s3723_s20 = inlined_call_operand.vmem [shape: f32[1,10], index: 20, kind: input, shape index: {}]   ;;  %s3724_s21 = inlined_call_operand.vmem [shape: f32[100,8,32], index: 21, kind: output, shape index: {0}]   ;;  %s3725_s22 = inlined_call_operand.vmem [shape: f32[100,8,32], index: 22, kind: output, shape index: {1}]   ;;  %s3726_s23 = inlined_call_operand.vmem [shape: f32[100,8,32], index: 23, kind: output, shape index: {2}]   ;;  %s3727_s24 = inlined_call_operand.vmem [shape: f32[100,8,32], index: 24, kind: output, shape index: {3}]   ;;  %s3728_s25 = inlined_call_operand.vmem [shape: f32[100,8,32], index: 25, kind: output, shape index: {4}]   ;;  %s3729_s26 = inlined_call_operand.vmem [shape: f32[100,8,32], index: 26, kind: output, shape index: {5}]   ;;  %s3730_s27 = inlined_call_operand.vmem [shape: f32[100,8,10], index: 27, kind: output, shape index: {6}]  }
   0x1   :  { %3747 = sst [smem:[#allocation10_spill]] %s3703_s0 }
   0x2   :  { %3748 = sst [smem:[#allocation11_spill]] %s3704_s1 }
   0x3   :  { %3749 = sst [smem:[#allocation12_spill]] %s3705_s2 }
   0x4   :  { %3750 = sst [smem:[#allocation13_spill]] %s3706_s3 }
   0x5   :  { %3751 = sst [smem:[#allocation14_spill]] %s3707_s4 }
   0x6   :  { %3752 = sst [smem:[#allocation15_spill]] %s3708_s5 }
   0x7   :  { %3753 = sst [smem:[#allocation16_spill]] %s3709_s6 }
   0x8   :  { %3754 = sst [smem:[#allocation17_spill]] %s3710_s7  ;;  %s3217_s7 = smov 0  }
   0x9   :  { %3755 = sst [smem:[#allocation18_spill]] %s3711_s8 }
   0xa   :  { %3756 = sst [smem:[#allocation19_spill]] %s3712_s9 }
   0xb   :  { %3757 = sst [smem:[#allocation20_spill]] %s3713_s10 }
   0xc   :  { %3758 = sst [smem:[#allocation21_spill]] %s3714_s11 }
   0xd   :  { %3759 = sst [smem:[#allocation22_spill]] %s3719_s16 }
   0xe   :  { %3760 = sst [smem:[#allocation23_spill]] %s3721_s18 }
   0xf   :  { %3761 = sst [smem:[#allocation24_spill]] %s3722_s19 }
  0x10   :  { %3762 = sst [smem:[#allocation25_spill]] %s3723_s20 }
  0x11 LB: > { %3763 = sst [smem:[#allocation9_spill]] %s3036_s7  ;;  %s2556_s4 = sadd.s32 4294967295, %s3036_s7   ;;  %s3036_s7 = sphi %s3217_s7, %s38_s7  }
  0x12   : > { %p2560_p0 = scmp.ge.s32.totalorder %s3036_s7, 1  ;;  %p751_p1 = scmp.lt.s32.totalorder %s3036_s7, 5 }
  0x14   : > { %p752_p2 = pnand %p2560_p0, %p751_p1 }
  0x15   : > { %s853_s8 = smul.u32 (!%p752_p2), 25, %s2556_s4  ;;  %p2569_p4 = scmp.ne.s32.totalorder (!%p752_p2), %s2556_s4, 0 }
  0x16   : > { %755 = sbr.rel (%p752_p2) target bundleno = 1707 (0x6ab), region = 104 }
  0x17   : > { %p854_p3 = scmp.lt.s32.totalorder (!%p752_p2), %s853_s8, 99 }
  0x1d   : > { %s3805_s8 = smov (!%p854_p3, %s853_s8), 99  ;;  %904 = sbr.rel (%p2569_p4) target bundleno = 161 (0xa1), region = 108 }
  0x1e   : > { %s3225_s30 = sshll.u32 %s3805_s8, 3  ;;  %s3765_s8 = sld [smem:[#allocation11_spill]] (!%p2569_p4)  ;;  %vm907_vm0 = vcmask (!%p2569_p4), 261120   ;;  %vm931_vm1 = vcmask (!%p2569_p4), 80896  }
  0x1f   : > { %s3070_s18 = smov (!%p2569_p4), 96   ;;  %s3071_s16 = smov (!%p2569_p4), 32  }
  0x20   : > { %s3072_s19 = smov (!%p2569_p4), 64  }
  0x24   : > { %v905_v0 = vld [vmem:[%s3765_s8] sm:$0xff]  ;;  %v906_v1 = vld [vmem:[%s3765_s8 + $0x8] sm:$0xff] }
  0x25   : > { %910 = vrot.lane.b32.xlu0 %v905_v0, %s3070_s18  ;;  %908 = vst.msk [vmem:[#allocation2] sm:$0xff] %vm907_vm0, %v905_v0  ;;  %918 = vrot.lane.b32.xlu1 %v905_v0, %s3071_s16  ;;  %922 = vst.msk [vmem:[#allocation6] sm:$0xff] %vm907_vm0, %v906_v1 }
  0x29   : > { %914 = vrot.lane.b32.xlu0 %v905_v0, %s3072_s19  ;;  %924 = vrot.lane.b32.xlu1 %v906_v1, %s3070_s18 }
  0x2d   : > { %928 = vrot.lane.b32.xlu0 %v906_v1, %s3072_s19 }
  0x97   : > { %v911_v2 = vpop.permute.xlu0 %910  ;;  %v919_v3 = vpop.permute.xlu1 %918 }
  0x98   : > { %913 = vst.msk [vmem:[#allocation3] sm:$0xff] %vm907_vm0, %v911_v2  ;;  %921 = vst.msk [vmem:[#allocation5] sm:$0xff] %vm907_vm0, %v919_v3 }
  0x9b   : > { %v915_v4 = vpop.permute.xlu0 %914  ;;  %v925_v5 = vpop.permute.xlu1 %924 }
  0x9c   : > { %917 = vst.msk [vmem:[#allocation4] sm:$0xff] %vm907_vm0, %v915_v4  ;;  %927 = vst.msk [vmem:[#allocation7] sm:$0xff] %vm907_vm0, %v925_v5 }
  0x9f   : > { %v929_v6 = vpop.permute.xlu0 %928 }
  0xa0   : > { %932 = vst.msk [vmem:[#allocation8] sm:$0xff] %vm931_vm1, %v929_v6 }
  0xa1 PF: > { %v933_v7 = vld [vmem:[#allocation2] sm:$0xff]   ;;  %v934_v8 = vld [vmem:[#allocation3] sm:$0xff]   ;;  %v936_v10 = vld [vmem:[#allocation5] sm:$0xff]   ;;  %s3285_s4 = smov 0  }
  0xa2   : > { %v937_v11 = vld [vmem:[#allocation6] sm:$0xff]  }
  0xa3   : > { %v935_v9 = vld [vmem:[#allocation4] sm:$0xff]   ;;  %v938_v12 = vld [vmem:[#allocation7] sm:$0xff]  }
  0xa7   : > { %v939_v13 = vld [vmem:[#allocation8] sm:$0xff]  }
  0xa8 LB: >> { %s3766_s29 = sld [smem:[#allocation12_spill]]  ;;  %v3073_v17 = vmov 0.0|0.0   ;;  %vm3074_vm2 = vmmov 0   ;;  %v3075_v20 = vmov 0.0   ;;  %vm957_vm3 = vcmask 261120   ;;  %s3767_s1 = sld [smem:[#allocation15_spill]]  ;;  %s3068_s4 = sphi %s3285_s4, %s945_s4   ;;  %v3064_v7 = vphi %v933_v7, %v3802_v7   ;;  %v3060_v8 = vphi %v934_v8, %v3801_v8   ;;  %v3056_v9 = vphi %v935_v9, %v3800_v9   ;;  %v3052_v10 = vphi %v936_v10, %v3799_v10   ;;  %v3048_v11 = vphi %v937_v11, %v3798_v11   ;;  %v3044_v12 = vphi %v938_v12, %v3797_v12   ;;  %v3040_v13 = vphi %v939_v13, %v3796_v13  }
  0xa9   : >> { %2811 = vmatprep.subr.bf16.mxu0 %v3073_v17  ;;  %2673 = vmatprep.mubr.msk.f32.mxu0 %vm3074_vm2, %v3075_v20  ;;  %s3768_s18 = sld [smem:[#allocation14_spill]]  ;;  %s3769_s11 = sld [smem:[#allocation18_spill]]  ;;  %vm2063_vm6 = vcmask 1041408   ;;  %vm3076_vm7 = vmmov 1   ;;  %vm2031_vm9 = vcmask 80896  }
  0xaa   : >> { %2817 = vmatprep.subr.bf16.mxu1 %v3073_v17  ;;  %2684 = vmatprep.mubr.msk.f32.mxu1 %vm3074_vm2, %v3075_v20  ;;  %s3388_s20 = sshll.u32 %s3068_s4, 3  ;;  %s3770_s3 = sld [smem:[#allocation10_spill]]  ;;  %vm2885_vm8 = vmpackc.low %vm2063_vm6, %vm3076_vm7 }
  0xab   : >> { %s3772_s28 = sld [smem:[#allocation17_spill]]  ;;  %s3773_s10 = sld [smem:[#allocation13_spill]] }
  0xac   : >> { %s3774_s2 = sld [smem:[#allocation20_spill]]  ;;  %s3775_s0 = sld [smem:[#allocation16_spill]] }
  0xad   : >> { %s3777_s6 = scalar_lea.vmem %s3726_s23, %s3225_s30  ;;  %s3779_s9 = scalar_lea.vmem %s3725_s22, %s3225_s30 }
  0xae   : >> { %v953_v14 = vld [vmem:[%s3766_s29] sm:$0xff]  ;;  %v954_v15 = vld [vmem:[%s3766_s29 + $0x8] sm:$0xff]  ;;  %v955_v16 = vld [vmem:[%s3766_s29 + $0x10] sm:$0xff]  ;;  %s2235_s16 = scalar_lea.vmem %s3777_s6, %s3388_s20  ;;  %s3785_s8 = sld [smem:[#allocation22_spill]] }
  0xaf   : >> { %v2812_v18 = vpack.c.bf16 %v954_v15, %v953_v14  ;;  %v956_v19 = vld [vmem:[%s3766_s29 + $0x18] sm:$0xff]  ;;  %v1064_v22 = vld [vmem:[%s3767_s1] sm:$0xff]  ;;  %v1065_v23 = vld [vmem:[%s3767_s1 + $0x8] sm:$0xff]  ;;  %s945_s4 = sadd.s32 1, %s3068_s4  }
  0xb0   : >> { %v2815_v21 = vpack.c.bf16 %v956_v19, %v955_v16  ;;  %v2818_v24 = vpack.c.bf16 %v1065_v23, %v1064_v22  ;;  %v1060_v25 = vld [vmem:[%s3768_s18] sm:$0xff]  ;;  %v1061_v26 = vld [vmem:[%s3768_s18 + $0x8] sm:$0xff]  ;;  %v1066_v28 = vld [vmem:[%s3767_s1 + $0x10] sm:$0xff]  ;;  %s3771_s7 = scalar_lea.vmem %s3770_s3, %s3225_s30  ;;  %s3776_s3 = sld [smem:[#allocation19_spill]] }
  0xb1   : >> { %2813 = vmatpush3.bf16.msra.mxu0 %v2812_v18  ;;  %v2824_v27 = vpack.c.bf16 %v1061_v26, %v1060_v25  ;;  %v1067_v29 = vld [vmem:[%s3767_s1 + $0x18] sm:$0xff]  ;;  %v1062_v31 = vld [vmem:[%s3768_s18 + $0x10] sm:$0xff]  ;;  %v1232_v34 = vld [vmem:[%s3769_s11] sm:$0xff]  ;;  %s1057_s5 = scalar_lea.vmem %s3771_s7, %s3388_s20  ;;  %s2233_s1 = scalar_lea.vmem %s3779_s9, %s3388_s20 }
  0xb2   : >> { %2814 = vmatprep.subr.bf16.mxu0 %v3073_v17  ;;  %2819 = vmatpush3.bf16.msra.mxu1 %v2818_v24  ;;  %v2821_v30 = vpack.c.bf16 %v1067_v29, %v1066_v28  ;;  %v1063_v32 = vld [vmem:[%s3768_s18 + $0x18] sm:$0xff]  ;;  %v1233_v35 = vld [vmem:[%s3769_s11 + $0x8] sm:$0xff]  ;;  %v1234_v37 = vld [vmem:[%s3769_s11 + $0x10] sm:$0xff]  ;;  %s3783_s7 = sld [smem:[#allocation21_spill]]  ;;  %p942_p5 = scmp.ge.s32.totalorder %s945_s4, 25  }
  0xb3   : >> { %2820 = vmatprep.subr.bf16.mxu1 %v3073_v17  ;;  %v2827_v33 = vpack.c.bf16 %v1063_v32, %v1062_v31  ;;  %v2830_v36 = vpack.c.bf16 %v1233_v35, %v1232_v34  ;;  %v1235_v38 = vld [vmem:[%s3769_s11 + $0x18] sm:$0xff]  ;;  %v1228_v0 = vld [vmem:[%s3772_s28] sm:$0xff]  ;;  %v1229_v1 = vld [vmem:[%s3772_s28 + $0x8] sm:$0xff] }
  0xb4   : >> { %v2833_v39 = vpack.c.bf16 %v1235_v38, %v1234_v37  ;;  %v1058_v3 = vld [vmem:[%s1057_s5] sm:$0xff]  ;;  %v2836_v5 = vpack.c.bf16 %v1229_v1, %v1228_v0  ;;  %v1230_v14 = vld [vmem:[%s3772_s28 + $0x10] sm:$0xff]  ;;  %v1231_v15 = vld [vmem:[%s3772_s28 + $0x18] sm:$0xff]  ;;  %s3781_s5 = scalar_lea.vmem %s3724_s21, %s3225_s30 }
  0xb5   : >> { %2816 = vmatpush3.bf16.msra.mxu0 %v2815_v21  ;;  %v2839_v16 = vpack.c.bf16 %v1231_v15, %v1230_v14  ;;  %v1407_v23 = vld [vmem:[%s3773_s10] sm:$0xff]  ;;  %v1408_v24 = vld [vmem:[%s3773_s10 + $0x8] sm:$0xff]  ;;  %v1409_v26 = vld [vmem:[%s3773_s10 + $0x10] sm:$0xff]  ;;  %s2231_s6 = scalar_lea.vmem %s3781_s5, %s3388_s20 }
  0xb6   : >> { %2823 = vmatprep.subr.bf16.mxu0 %v3073_v17  ;;  %2822 = vmatpush3.bf16.msra.mxu1 %v2821_v30  ;;  %v2842_v25 = vpack.c.bf16 %v1408_v24, %v1407_v23  ;;  %v1505_v29 = vld [vmem:[%s3774_s2] sm:$0xff]  ;;  %v1506_v30 = vld [vmem:[%s3774_s2 + $0x8] sm:$0xff]  ;;  %v1507_v31 = vld [vmem:[%s3774_s2 + $0x10] sm:$0xff] }
  0xb7   : >> { %2829 = vmatprep.subr.bf16.mxu1 %v3073_v17  ;;  %v2848_v32 = vpack.c.bf16 %v1506_v30, %v1505_v29  ;;  %v1613_v14 = vld [vmem:[%s3715_s12 + $0x10] sm:$0xff]  ;;  %v1614_v15 = vld [vmem:[%s3715_s12 + $0x18] sm:$0xff]  ;;  %v1780_v23 = vld [vmem:[%s3718_s15 + $0x8] sm:$0xff] }
  0xb8   : >> { %2674 = vmatmul.mubr.msk.f32.vlgmr.msra.gmra.mrb[0].mxu0 %vm957_vm3, %v3060_v8  ;;  %s3784_s5 = smov %s3783_s7 }
  0xb9   : >> { %2695 = vmatprep.mubr.msk.f32.mxu0 %vm3074_vm2, %v3075_v20  ;;  %2825 = vmatpush3.bf16.msra.mxu0 %v2824_v27  ;;  %v1410_v27 = vld [vmem:[%s3773_s10 + $0x18] sm:$0xff] }
  0xba   : >> { %2826 = vmatprep.subr.bf16.mxu0 %v3073_v17  ;;  %2685 = vmatmul.mubr.msk.f32.vlgmr.msra.gmra.mrb[0].mxu1 %vm957_vm3, %v3064_v7  ;;  %v2845_v28 = vpack.c.bf16 %v1410_v27, %v1409_v26  ;;  %v1782_v26 = vld [vmem:[%s3718_s15 + $0x18] sm:$0xff] }
  0xbb   : >> { %2831 = vmatpush3.bf16.msra.mxu1 %v2830_v36  ;;  %2706 = vmatprep.mubr.msk.f32.mxu1 %vm3074_vm2, %v3075_v20  ;;  %v2574_v36 = vld [vmem:[%s3775_s0] ss:$0 sm:$0xff]  ;;  %s3788_s0 = scalar_lea.vmem %s3728_s25, %s3225_s30 }
  0xbc   : >> { %2832 = vmatprep.subr.bf16.mxu1 %v3073_v17  ;;  %s2239_s9 = scalar_lea.vmem %s3788_s0, %s3388_s20  ;;  %s3795_s0 = scalar_lea.vmem %s3730_s27, %s3225_s30 }
  0xbd   : >> { %2828 = vmatpush3.bf16.msra.mxu0 %v2827_v33  ;;  %v1508_v33 = vld [vmem:[%s3774_s2 + $0x18] sm:$0xff]  ;;  %s3790_s2 = scalar_lea.vmem %s3727_s24, %s3225_s30 }
  0xbe   : >> { %2835 = vmatprep.subr.bf16.mxu0 %v3073_v17  ;;  %v2851_v34 = vpack.c.bf16 %v1508_v33, %v1507_v31 }
  0xbf   : >> { %2834 = vmatpush3.bf16.msra.mxu1 %v2833_v39 }
  0xc0   : >> { %2841 = vmatprep.subr.bf16.mxu1 %v3073_v17 }
  0xc2   : >> { %2707 = vmatmul.mubr.msk.f32.vlgmr.msra.gmra.mrb[2].mxu1 %vm957_vm3, %v3056_v9 }
  0xc3   : >> { %2728 = vmatprep.mubr.msk.f32.mxu1 %vm3074_vm2, %v3075_v20  ;;  %2843 = vmatpush3.bf16.msra.mxu1 %v2842_v25  ;;  %v1781_v25 = vld [vmem:[%s3718_s15 + $0x10] sm:$0xff] }
  0xc4   : >> { %2844 = vmatprep.subr.bf16.mxu1 %v3073_v17  ;;  %v2869_v27 = vpack.c.bf16 %v1782_v26, %v1781_v25 }
  0xc7   : >> { %2846 = vmatpush3.bf16.msra.mxu1 %v2845_v28 }
  0xc8   : >> { %2853 = vmatprep.subr.bf16.mxu1 %v3073_v17 }
  0xca   : >> { %2729 = vmatmul.mubr.msk.f32.vlgmr.msra.gmra.mrb[4].mxu1 %vm957_vm3, %v3060_v8 }
  0xcb   : >> { %2750 = vmatprep.mubr.msk.f32.mxu1 %vm3074_vm2, %v3075_v20 }
 0x18b   : >> { %v1027_v40 = vpop.f32.mrb[0].mxu0 }
 0x18c   : >> { %v1031_v41 = vsel %vm957_vm3, %v1027_v40, 0.0  ;;  %v1040_v42 = vmul.f32 %v1027_v40, %v1027_v40  ;;  %v2675_v43 = vpop.f32.mrb[1].mxu0 }
 0x18d   : >> { %v1032_v44 = vrot.slane %v1031_v41, 4  ;;  %v1137_v18 = vpop.f32.mrb[0].mxu1 }
 0x18e   : >> { %v1041_v45 = vsel %vm957_vm3, %v1040_v42, 0.0  ;;  %v2686_v19 = vpop.f32.mrb[1].mxu1  ;;  %v2578_v42 = vld [vmem:[%s3776_s3] ss:$0 sm:$0xff]  ;;  %s2237_s3 = scalar_lea.vmem %s3790_s2, %s3388_s20 }
 0x18f   : >> { %v1033_v46 = vadd.f32 %v1032_v44, %v1031_v41  ;;  %v1042_v47 = vrot.slane %v1041_v45, 4  ;;  %v1610_v19 = vld [vmem:[%s3784_s5 + $0x18] sm:$0xff] }
 0x191   : >> { %v1034_v48 = vrot.slane %v1033_v46, 2  ;;  %v1043_v49 = vadd.f32 %v1042_v47, %v1041_v45 }
 0x193   : >> { %v1035_v50 = vadd.f32 %v1034_v48, %v1033_v46  ;;  %v1044_v51 = vrot.slane %v1043_v49, 2 }
 0x195   : >> { %v1036_v52 = vrot.slane %v1035_v50, 1  ;;  %v1045_v53 = vadd.f32 %v1044_v51, %v1043_v49  ;;  %v1305_v21 = vpop.f32.mrb[2].mxu1 }
 0x196   : >> { %v2708_v22 = vpop.f32.mrb[3].mxu1 }
 0x197   : >> { %v1037_v54 = vadd.f32 %v1036_v52, %v1035_v50  ;;  %v1046_v55 = vrot.slane %v1045_v53, 1  ;;  %v1779_v22 = vld [vmem:[%s3718_s15] sm:$0xff] }
 0x198   : >> { %v2866_v24 = vpack.c.bf16 %v1780_v23, %v1779_v22  ;;  %v1776_v22 = vld [vmem:[%s3717_s14 + $0x8] sm:$0xff] }
 0x199   : >> { %v1039_v56 = vmul.f32 0.125, %v1037_v54  ;;  %v1047_v57 = vadd.f32 %v1046_v55, %v1045_v53 }
 0x19b   : >> { %v1048_v58 = vmul.f32 0.125, %v1047_v57  ;;  %v1049_v59 = vmul.f32 %v1039_v56, %v1039_v56  ;;  %v1051_v62 = vsub.f32 %v1027_v40, %v1039_v56 }
 0x19d   : >> { %v1050_v60 = vsub.f32 %v1048_v58, %v1049_v59  ;;  %v1052_v63 = vmul.f32 0.1, %v1051_v62 }
 0x19f   : >> { %v1053_v61 = vadd.f32 1e-05, %v1050_v60 }
 0x1a1   : >> { %2970 = vrsqrt.f32 %v1053_v61 }
 0x1ab   : >> { %v2971_v2 = vpop.eup %2970 }
 0x1ac   : >> { %v1055_v4 = vmul.f32 %v2971_v2, %v1052_v63  ;;  %v1611_v2 = vld [vmem:[%s3715_s12] sm:$0xff] }
 0x1ae   : >> { %v1059_v6 = vadd.f32 %v1058_v3, %v1055_v4  ;;  %v1612_v3 = vld [vmem:[%s3715_s12 + $0x8] sm:$0xff] }
 0x1af   : >> { %v2854_v4 = vpack.c.bf16 %v1612_v3, %v1611_v2 }
 0x1b0   : >> { %2696 = vmatmul.mubr.msk.f32.vlgmr.msra.gmra.mrb[2].mxu0 %vm957_vm3, %v1059_v6  ;;  %v1399_v51 = vsub.f32 %v1059_v6, %v3064_v7 }
 0x1b1   : >> { %2837 = vmatpush3.bf16.msra.mxu0 %v2836_v5  ;;  %2717 = vmatprep.mubr.msk.f32.mxu0 %vm3074_vm2, %v3075_v20  ;;  %v1607_v5 = vld [vmem:[%s3783_s7] sm:$0xff]  ;;  %s3786_s7 = scalar_lea.vmem %s3729_s26, %s3225_s30 }
 0x1b2   : >> { %2838 = vmatprep.subr.bf16.mxu0 %v3073_v17  ;;  %2855 = vmatpush3.bf16.msra.mxu1 %v2854_v4 }
 0x1b3   : >> { %2856 = vmatprep.subr.bf16.mxu1 %v3073_v17 }
 0x1b5   : >> { %2840 = vmatpush3.bf16.msra.mxu0 %v2839_v16  ;;  %v2857_v16 = vpack.c.bf16 %v1614_v15, %v1613_v14 }
 0x1b6   : >> { %2847 = vmatprep.subr.bf16.mxu0 %v3073_v17 }
 0x1b7   : >> { %2858 = vmatpush3.bf16.msra.mxu1 %v2857_v16 }
 0x1b8   : >> { %2718 = vmatmul.mubr.msk.f32.vlgmr.msra.gmra.mrb[4].mxu0 %vm957_vm3, %v1059_v6  ;;  %2865 = vmatprep.subr.bf16.mxu1 %v3073_v17 }
 0x1b9   : >> { %2739 = vmatprep.mubr.msk.f32.mxu0 %vm3074_vm2, %v3075_v20  ;;  %2849 = vmatpush3.bf16.msra.mxu0 %v2848_v32 }
 0x1ba   : >> { %2850 = vmatprep.subr.bf16.mxu0 %v3073_v17  ;;  %2751 = vmatmul.mubr.msk.f32.vlgmr.msra.gmra.mrb[6].mxu1 %vm957_vm3, %v3052_v10 }
 0x1bb   : >> { %2867 = vmatpush3.bf16.msra.mxu1 %v2866_v24  ;;  %2772 = vmatprep.mubr.msk.f32.mxu1 %vm3074_vm2, %v3075_v20 }
 0x1bc   : >> { %2868 = vmatprep.subr.bf16.mxu1 %v3073_v17 }
 0x1bd   : >> { %2852 = vmatpush3.bf16.msra.mxu0 %v2851_v34 }
 0x1be   : >> { %2859 = vmatprep.subr.bf16.mxu0 %v3073_v17 }
 0x1bf   : >> { %2870 = vmatpush3.bf16.msra.mxu1 %v2869_v27 }
 0x1c0   : >> { %2877 = vmatprep.subr.bf16.mxu1 %v3073_v17 }
 0x1c2   : >> { %2773 = vmatmul.mubr.msk.f32.vlgmr.msra.gmra.mrb[8].mxu1 %vm957_vm3, %v3044_v12 }
 0x1c3   : >> { %2794 = vmatprep.mubr.msk.f32.mxu1 %vm3074_vm2, %v3075_v20 }
 0x283   : >> { %v1210_v35 = vpop.f32.mrb[2].mxu0 }
 0x284   : >> { %v1211_v37 = vadd.f32 %v1210_v35, %v1137_v18  ;;  %v2697_v38 = vpop.f32.mrb[3].mxu0  ;;  %v1609_v18 = vld [vmem:[%s3784_s5 + $0x10] sm:$0xff] }
 0x286   : >> { %v1221_v39 = vadd.f32 %v2574_v36, %v1211_v37 }
 0x288   : >> { %v2575_v40 = vmul.f32 -1.442695, %v1221_v39 }
 0x28a   : >> { %2972 = vpow2.f32 %v2575_v40 }
 0x28b   : >> { %v1375_v41 = vpop.f32.mrb[4].mxu0 }
 0x28c   : >> { %v1376_v43 = vadd.f32 %v1375_v41, %v1305_v21  ;;  %v2719_v44 = vpop.f32.mrb[5].mxu0  ;;  %v2863_v21 = vpack.c.bf16 %v1610_v19, %v1609_v18 }
 0x28e   : >> { %v1386_v45 = vadd.f32 %v2578_v42, %v1376_v43 }
 0x290   : >> { %v2579_v46 = vmul.f32 -1.442695, %v1386_v45 }
 0x292   : >> { %2974 = vpow2.f32 %v2579_v46 }
 0x294   : >> { %v2973_v47 = vpop.eup %2972 }
 0x295   : >> { %v1225_v48 = vadd.f32 1.0, %v2973_v47 }
 0x297   : >> { %2976 = vrcp.f32 %v1225_v48 }
 0x29c   : >> { %v2975_v49 = vpop.eup %2974 }
 0x29d   : >> { %v1390_v50 = vadd.f32 1.0, %v2975_v49 }
 0x29f   : >> { %2978 = vrcp.f32 %v1390_v50 }
 0x2a1   : >> { %v2977_v52 = vpop.eup %2976 }
 0x2a2   : >> { %v1400_v53 = vmul.f32 %v2977_v52, %v1399_v51 }
 0x2a4   : >> { %v1401_v61 = vadd.f32 %v3064_v7, %v1400_v53 }
 0x2a9   : >> { %v2979_v54 = vpop.eup %2978 }
 0x2aa   : >> { %v1394_v55 = vsub.f32 1.0, %v2979_v54  ;;  %v1393_v56 = vmul.f32 %v3056_v9, %v2979_v54 }
 0x2ac   : >> { %v1395_v57 = vmul.f32 %v3060_v8, %v1394_v55 }
 0x2ae   : >> { %v3463_v9 = vadd.f32 %v1395_v57, %v1393_v56  }
 0x2b0   : >> { %v3778_v58 = vmov %v3463_v9 }
 0x2b1   : >> { %v1397_v59 = vmul.f32 1.8, %v3778_v58  ;;  %2236 = vst.msk [vmem:[%s2235_s16] sm:$0xff] %vm957_vm3, %v3778_v58  ;;  %s3792_s16 = sld [smem:[#allocation24_spill]]  ;;  %2248 = vst.msk [vmem:[#allocation4] sm:$0xff] (%p942_p5), %vm957_vm3, %v3778_v58 }
 0x2b3   : >> { %v1398_v60 = vadd.f32 0.1, %v1397_v59 }
 0x2b5   : >> { %v1402_v62 = vsub.f32 %v1401_v61, %v1398_v60 }
 0x2b7   : >> { %vm1403_vm4 = vcmp.gt.f32.partialorder %v1402_v62, 0.0 }
 0x2b8   : >> { %v3476_v8 = vsel %vm1403_vm4, 1.0, %v3075_v20  }
 0x2b9   : >> { %v3780_v63 = vmov %v3476_v8  ;;  %v3495_v8 = vpop.f32.mrb[4].mxu1 }
 0x2ba   : >> { %v1405_v9 = vsub.f32 1.0, %v3780_v63  ;;  %2740 = vmatmul.mubr.msk.f32.vlgmr.msra.gmra.mrb[6].mxu0 %vm957_vm3, %v3780_v63  ;;  %2234 = vst.msk [vmem:[%s2233_s1] sm:$0xff] %vm957_vm3, %v3780_v63  ;;  %v2730_v1 = vpop.f32.mrb[5].mxu1  ;;  %v1481_v28 = vsel %vm957_vm3, %v3495_v8, 0.0  ;;  %v1489_v29 = vmul.f32 %v3495_v8, %v3495_v8  ;;  %2247 = vst.msk [vmem:[#allocation3] sm:$0xff] (%p942_p5), %vm957_vm3, %v3780_v63 }
 0x2bb   : >> { %2761 = vmatprep.mubr.msk.f32.mxu0 %vm3074_vm2, %v3075_v20  ;;  %v1482_v30 = vrot.slane %v1481_v28, 4 }
 0x2bc   : >> { %v3491_v7 = vmul.f32 %v1405_v9, %v1401_v61   ;;  %v1490_v31 = vsel %vm957_vm3, %v1489_v29, 0.0 }
 0x2bd   : >> { %v1483_v32 = vadd.f32 %v1482_v30, %v1481_v28  ;;  %v1491_v33 = vrot.slane %v1490_v31, 4  ;;  %v1778_v28 = vld [vmem:[%s3717_s14 + $0x18] sm:$0xff]  ;;  %v1684_v30 = vpop.f32.mrb[6].mxu1 }
 0x2be   : >> { %v3782_v0 = vmov %v3491_v7  ;;  %v1608_v7 = vld [vmem:[%s3784_s5 + $0x8] sm:$0xff] }
 0x2bf   : >> { %2232 = vst.msk [vmem:[%s2231_s6] sm:$0xff] %vm957_vm3, %v3782_v0  ;;  %v2860_v6 = vpack.c.bf16 %v1608_v7, %v1607_v5  ;;  %v1484_v34 = vrot.slane %v1483_v32, 2  ;;  %v1492_v35 = vadd.f32 %v1491_v33, %v1490_v31  ;;  %v2752_v31 = vpop.f32.mrb[7].mxu1  ;;  %s2241_s6 = scalar_lea.vmem %s3786_s7, %s3388_s20  ;;  %s3794_s7 = sld [smem:[#allocation25_spill]]  ;;  %2246 = vst.msk [vmem:[#allocation2] sm:$0xff] (%p942_p5), %vm957_vm3, %v3782_v0 }
 0x2c1   : >> { %2861 = vmatpush3.bf16.msra.mxu0 %v2860_v6  ;;  %v1485_v36 = vadd.f32 %v1484_v34, %v1483_v32  ;;  %v1493_v37 = vrot.slane %v1492_v35, 2  ;;  %v1852_v32 = vpop.f32.mrb[8].mxu1  ;;  %v1954_v34 = vld [vmem:[%s3720_s17] sm:$0xff] }
 0x2c2   : >> { %2862 = vmatprep.subr.bf16.mxu0 %v3073_v17  ;;  %v2774_v33 = vpop.f32.mrb[9].mxu1 }
 0x2c3   : >> { %v1486_v38 = vrot.slane %v1485_v36, 1  ;;  %v1494_v39 = vadd.f32 %v1493_v37, %v1492_v35  ;;  %v1955_v35 = vld [vmem:[%s3720_s17 + $0x8] sm:$0xff] }
 0x2c4   : >> { %v2878_v37 = vpack.c.bf16 %v1955_v35, %v1954_v34 }
 0x2c5   : >> { %2864 = vmatpush3.bf16.msra.mxu0 %v2863_v21  ;;  %v1487_v40 = vadd.f32 %v1486_v38, %v1485_v36  ;;  %v1495_v41 = vrot.slane %v1494_v39, 1  ;;  %v1775_v21 = vld [vmem:[%s3717_s14] sm:$0xff]  ;;  %v1956_v36 = vld [vmem:[%s3720_s17 + $0x10] sm:$0xff]  ;;  %v1957_v38 = vld [vmem:[%s3720_s17 + $0x18] sm:$0xff] }
 0x2c6   : >> { %2871 = vmatprep.subr.bf16.mxu0 %v3073_v17  ;;  %v2872_v26 = vpack.c.bf16 %v1776_v22, %v1775_v21  ;;  %2879 = vmatpush3.bf16.msra.mxu1 %v2878_v37 }
 0x2c7   : >> { %v1488_v48 = vmul.f32 0.125, %v1487_v40  ;;  %v1496_v49 = vadd.f32 %v1495_v41, %v1494_v39  ;;  %v2881_v39 = vpack.c.bf16 %v1957_v38, %v1956_v36  ;;  %2880 = vmatprep.subr.bf16.mxu1 %v3073_v17  ;;  %v2584_v41 = vld [vmem:[%s3716_s13] ss:$0 sm:$0xff] }
 0x2c9   : >> { %v1497_v54 = vmul.f32 0.125, %v1496_v49  ;;  %v1498_v55 = vmul.f32 %v1488_v48, %v1488_v48  ;;  %v1500_v14 = vsub.f32 %v3495_v8, %v1488_v48  ;;  %v1777_v8 = vld [vmem:[%s3717_s14 + $0x10] sm:$0xff] }
 0x2ca   : >> { %v2875_v29 = vpack.c.bf16 %v1778_v28, %v1777_v8  ;;  %2882 = vmatpush3.bf16.msra.mxu1 %v2881_v39 }
 0x2cb   : >> { %v1499_v61 = vsub.f32 %v1497_v54, %v1498_v55  ;;  %v1501_v16 = vmul.f32 0.1, %v1500_v14  ;;  %2887 = vmatprep.subr.bf16.mxu1 %v3073_v17 }
 0x2cd   : >> { %v1502_v3 = vadd.f32 1e-05, %v1499_v61 }
 0x2cf   : >> { %2980 = vrsqrt.f32 %v1502_v3 }
 0x2d9   : >> { %v2981_v18 = vpop.eup %2980 }
 0x2da   : >> { %v1504_v24 = vmul.f32 %v2981_v18, %v1501_v16 }
 0x38d   : >> { %v1578_v42 = vpop.f32.mrb[6].mxu0 }
 0x38e   : >> { %v1582_v43 = vsel %vm957_vm3, %v1578_v42, 0.0  ;;  %v1590_v44 = vmul.f32 %v1578_v42, %v1578_v42  ;;  %v2741_v45 = vpop.f32.mrb[7].mxu0 }
 0x38f   : >> { %v1583_v46 = vrot.slane %v1582_v43, 4 }
 0x390   : >> { %v1591_v47 = vsel %vm957_vm3, %v1590_v44, 0.0 }
 0x391   : >> { %v1584_v50 = vadd.f32 %v1583_v46, %v1582_v43  ;;  %v1592_v51 = vrot.slane %v1591_v47, 4 }
 0x393   : >> { %v1585_v52 = vrot.slane %v1584_v50, 2  ;;  %v1593_v53 = vadd.f32 %v1592_v51, %v1591_v47  ;;  %v2588_v47 = vld [vmem:[%s3785_s8] ss:$0 sm:$0xff]  ;;  %s3793_s8 = sld [smem:[#allocation23_spill]] }
 0x395   : >> { %v1586_v56 = vadd.f32 %v1585_v52, %v1584_v50  ;;  %v1594_v57 = vrot.slane %v1593_v53, 2 }
 0x397   : >> { %v1587_v59 = vrot.slane %v1586_v56, 1  ;;  %v1595_v60 = vadd.f32 %v1594_v57, %v1593_v53 }
 0x399   : >> { %v1588_v62 = vadd.f32 %v1587_v59, %v1586_v56  ;;  %v1596_v9 = vrot.slane %v1595_v60, 1 }
 0x39b   : >> { %v1589_v1 = vmul.f32 0.125, %v1588_v62  ;;  %v1597_v2 = vadd.f32 %v1596_v9, %v1595_v60 }
 0x39d   : >> { %v1598_v4 = vmul.f32 0.125, %v1597_v2  ;;  %v1599_v5 = vmul.f32 %v1589_v1, %v1589_v1  ;;  %v1601_v15 = vsub.f32 %v1578_v42, %v1589_v1 }
 0x39f   : >> { %v1600_v7 = vsub.f32 %v1598_v4, %v1599_v5  ;;  %v1602_v19 = vmul.f32 0.1, %v1601_v15  ;;  %v2056_v15 = vld [vmem:[%s3793_s8] sm:$0xff] }
 0x3a1   : >> { %v1603_v6 = vadd.f32 1e-05, %v1600_v7  ;;  %v2059_v7 = vld [vmem:[%s3792_s16 + $0x8] sm:$0x3] }
 0x3a3   : >> { %2982 = vrsqrt.f32 %v1603_v6 }
 0x3ad   : >> { %v2983_v23 = vpop.eup %2982 }
 0x3ae   : >> { %v1605_v25 = vmul.f32 %v2983_v23, %v1602_v19 }
 0x3b0   : >> { %v1606_v27 = vadd.f32 %v1605_v25, %v1504_v24 }
 0x3b2   : >> { %2762 = vmatmul.mubr.msk.f32.vlgmr.msra.gmra.mrb[8].mxu0 %vm957_vm3, %v1606_v27  ;;  %v1946_v55 = vsub.f32 %v1606_v27, %v3052_v10 }
 0x3b3   : >> { %2873 = vmatpush3.bf16.msra.mxu0 %v2872_v26  ;;  %2783 = vmatprep.mubr.msk.f32.mxu0 %vm3074_vm2, %v3075_v20 }
 0x3b4   : >> { %2874 = vmatprep.subr.bf16.mxu0 %v3073_v17 }
 0x3b7   : >> { %2876 = vmatpush3.bf16.msra.mxu0 %v2875_v29 }
 0x3b8   : >> { %2883 = vmatprep.subr.bf16.mxu0 %v3073_v17 }
 0x3ba   : >> { %2784 = vmatmul.mubr.msk.f32.vlgmr.msra.gmra.mrb[10].mxu0 %vm957_vm3, %v1606_v27 }
 0x3bb   : >> { %2801 = vmatprep.mubr.msk.f32.mxu0 %vm3074_vm2, %v3075_v20 }
 0x485   : >> { %v1757_v40 = vpop.f32.mrb[8].mxu0 }
 0x486   : >> { %v1758_v42 = vadd.f32 %v1757_v40, %v1684_v30  ;;  %v2763_v43 = vpop.f32.mrb[9].mxu0 }
 0x488   : >> { %v1768_v44 = vadd.f32 %v2584_v41, %v1758_v42 }
 0x48a   : >> { %v2585_v45 = vmul.f32 -1.442695, %v1768_v44 }
 0x48c   : >> { %2984 = vpow2.f32 %v2585_v45 }
 0x48d   : >> { %v1922_v46 = vpop.f32.mrb[10].mxu0 }
 0x48e   : >> { %v1923_v48 = vadd.f32 %v1922_v46, %v1852_v32  ;;  %v2785_v49 = vpop.f32.mrb[11].mxu0  ;;  %v2595_v46 = vld [vmem:[%s3794_s7] ss:$0 sm:$0xff] }
 0x490   : >> { %v1933_v50 = vadd.f32 %v2588_v47, %v1923_v48 }
 0x492   : >> { %v2589_v17 = vmul.f32 -1.442695, %v1933_v50 }
 0x494   : >> { %2986 = vpow2.f32 %v2589_v17 }
 0x496   : >> { %v2985_v51 = vpop.eup %2984 }
 0x497   : >> { %v1772_v52 = vadd.f32 1.0, %v2985_v51 }
 0x499   : >> { %2988 = vrcp.f32 %v1772_v52 }
 0x49e   : >> { %v2987_v53 = vpop.eup %2986 }
 0x49f   : >> { %v1937_v54 = vadd.f32 1.0, %v2987_v53 }
 0x4a1   : >> { %2990 = vrcp.f32 %v1937_v54 }
 0x4a3   : >> { %v2989_v56 = vpop.eup %2988 }
 0x4a4   : >> { %v1947_v57 = vmul.f32 %v2989_v56, %v1946_v55 }
 0x4a6   : >> { %v1948_v3 = vadd.f32 %v3052_v10, %v1947_v57 }
 0x4ab   : >> { %v2991_v59 = vpop.eup %2990 }
 0x4ac   : >> { %v1941_v60 = vsub.f32 1.0, %v2991_v59  ;;  %v1940_v61 = vmul.f32 %v3044_v12, %v2991_v59 }
 0x4ae   : >> { %v1942_v62 = vmul.f32 %v3048_v11, %v1941_v60 }
 0x4b0   : >> { %v3604_v12 = vadd.f32 %v1942_v62, %v1940_v61  }
 0x4b2   : >> { %v3787_v1 = vmov %v3604_v12 }
 0x4b3   : >> { %v1944_v9 = vmul.f32 1.8, %v3787_v1  ;;  %2242 = vst.msk [vmem:[%s2241_s6] sm:$0xff] %vm957_vm3, %v3787_v1  ;;  %2251 = vst.msk [vmem:[#allocation7] sm:$0xff] (%p942_p5), %vm957_vm3, %v3787_v1 }
 0x4b5   : >> { %v1945_v2 = vadd.f32 0.1, %v1944_v9  ;;  %v3800_v9 = vmov %v3778_v58 }
 0x4b7   : >> { %v1949_v4 = vsub.f32 %v1948_v3, %v1945_v2 }
 0x4b9   : >> { %vm1950_vm5 = vcmp.gt.f32.partialorder %v1949_v4, 0.0 }
 0x4ba   : >> { %v3617_v11 = vsel %vm1950_vm5, 1.0, %v3075_v20  }
 0x4bb   : >> { %v3789_v5 = vmov %v3617_v11  ;;  %v2058_v11 = vld [vmem:[%s3792_s16] sm:$0xff] }
 0x4bc   : >> { %v1952_v12 = vsub.f32 1.0, %v3789_v5  ;;  %2795 = vmatmul.mubr.msk.f32.vlgmr.msra.gmra.mrb[10].mxu1 %vm957_vm3, %v3789_v5  ;;  %2240 = vst.msk [vmem:[%s2239_s9] sm:$0xff] %vm957_vm3, %v3789_v5  ;;  %v2884_v14 = vpack.c.bf16 %v2059_v7, %v2058_v11  ;;  %s2243_s9 = scalar_lea.vmem %s3795_s0, %s3388_s20  ;;  %v3798_v11 = vmov %v3789_v5  ;;  %v3802_v7 = vmov %v3782_v0  ;;  %2250 = vst.msk [vmem:[#allocation6] sm:$0xff] (%p942_p5), %vm957_vm3, %v3789_v5 }
 0x4bd   : >> { %2808 = vmatprep.mubr.msk.f32.mxu1 %vm3074_vm2, %v3075_v20 }
 0x4be   : >> { %v3632_v10 = vmul.f32 %v1952_v12, %v1948_v3   ;;  %2886 = vmatpush3.bf16.msk.msra.mxu0 %vm2885_vm8, %v2884_v14  ;;  %v3797_v12 = vmov %v3787_v1 }
 0x4c0   : >> { %v3791_v6 = vmov %v3632_v10  ;;  %v2057_v10 = vld [vmem:[%s3793_s8 + $0x8] sm:$0x3] }
 0x4c1   : >> { %2238 = vst.msk [vmem:[%s2237_s3] sm:$0xff] %vm957_vm3, %v3791_v6  ;;  %v2888_v20 = vpack.c.bf16 %v2057_v10, %v2056_v15  ;;  %2802 = vmatmul.mubr.msk.f32.vlgmr.msra.gmra.mrb[12].mxu0 %vm2031_vm9, %v3040_v13  ;;  %v3799_v10 = vmov %v3791_v6  ;;  %2249 = vst.msk [vmem:[#allocation5] sm:$0xff] (%p942_p5), %vm957_vm3, %v3791_v6 }
 0x4c3   : >> { %2890 = vmatpush3.bf16.msk.msra.mxu1 %vm2885_vm8, %v2888_v20 }
 0x58f   : >> { %v2027_v16 = vpop.f32.mrb[10].mxu1 }
 0x590   : >> { %v2032_v18 = vsel %vm2031_vm9, %v2027_v16, 0.0  ;;  %v2040_v19 = vmul.f32 %v2027_v16, %v2027_v16  ;;  %v2796_v21 = vpop.f32.mrb[11].mxu1 }
 0x591   : >> { %v2033_v22 = vrot.slane %v2032_v18, 4 }
 0x592   : >> { %v2041_v23 = vsel %vm2031_vm9, %v2040_v19, 0.0 }
 0x593   : >> { %v2034_v24 = vadd.f32 %v2033_v22, %v2032_v18  ;;  %v2042_v25 = vrot.slane %v2041_v23, 4 }
 0x594   : >> { %v2133_v43 = vpop.f32.mrb[12].mxu0 }
 0x595   : >> { %v2035_v26 = vrot.slane %v2034_v24, 2  ;;  %v2043_v27 = vadd.f32 %v2042_v25, %v2041_v23  ;;  %v2803_v44 = vpop.f32.mrb[13].mxu0 }
 0x597   : >> { %v2036_v8 = vadd.f32 %v2035_v26, %v2034_v24  ;;  %v2044_v28 = vrot.slane %v2043_v27, 2 }
 0x599   : >> { %v2037_v29 = vrot.slane %v2036_v8, 1  ;;  %v2045_v30 = vadd.f32 %v2044_v28, %v2043_v27 }
 0x59b   : >> { %v2038_v31 = vadd.f32 %v2037_v29, %v2036_v8  ;;  %v2046_v32 = vrot.slane %v2045_v30, 1  ;;  %v3801_v8 = vmov %v3780_v63 }
 0x59d   : >> { %v2039_v33 = vmul.f32 0.125, %v2038_v31  ;;  %v2047_v34 = vadd.f32 %v2046_v32, %v2045_v30 }
 0x59f   : >> { %v2048_v35 = vmul.f32 0.125, %v2047_v34  ;;  %v2049_v36 = vmul.f32 %v2039_v33, %v2039_v33  ;;  %v2051_v39 = vsub.f32 %v2027_v16, %v2039_v33 }
 0x5a1   : >> { %v2050_v37 = vsub.f32 %v2048_v35, %v2049_v36  ;;  %v2052_v40 = vmul.f32 0.1, %v2051_v39 }
 0x5a3   : >> { %v2053_v38 = vadd.f32 1e-05, %v2050_v37 }
 0x5a5   : >> { %2992 = vrsqrt.f32 %v2053_v38 }
 0x5af   : >> { %v2993_v41 = vpop.eup %2992 }
 0x5b0   : >> { %v2055_v42 = vmul.f32 %v2993_v41, %v2052_v40 }
 0x5b2   : >> { %2809 = vmatmul.mubr.msk.f32.vlgmr.msra.gmra.mrb[12].mxu1 %vm2031_vm9, %v2055_v42 }
 0x685   : >> { %v2209_v45 = vpop.f32.mrb[12].mxu1 }
 0x686   : >> { %v2210_v47 = vadd.f32 %v2209_v45, %v2133_v43  ;;  %v2810_v48 = vpop.f32.mrb[13].mxu1 }
 0x688   : >> { %v2220_v49 = vadd.f32 %v2595_v46, %v2210_v47 }
 0x68a   : >> { %v2596_v50 = vmul.f32 -1.442695, %v2220_v49 }
 0x68c   : >> { %2994 = vpow2.f32 %v2596_v50 }
 0x696   : >> { %v2995_v17 = vpop.eup %2994 }
 0x697   : >> { %v2224_v51 = vadd.f32 1.0, %v2995_v17 }
 0x699   : >> { %2996 = vrcp.f32 %v2224_v51 }
 0x6a3   : >> { %v2997_v52 = vpop.eup %2996 }
 0x6a4   : >> { %v2227_v53 = vsub.f32 1.0, %v2997_v52  ;;  %v2229_v55 = vmul.f32 %v2997_v52, %v2055_v42  ;;  %944 = sbr.rel (!%p942_p5) target bundleno = 168 (0xa8), region = 225 }
 0x6a6   : >> { %v2228_v54 = vmul.f32 %v3040_v13, %v2227_v53 }
 0x6a8   : >> { %v2230_v56 = vadd.f32 %v2229_v55, %v2228_v54  }
 0x6aa   : >> { %2244 = vst.msk [vmem:[%s2243_s9] sm:$0xff] %vm2031_vm9, %v2230_v56  ;;  %v3796_v13 = vmov %v2230_v56  ;;  %2253 = vst.msk [vmem:[#allocation8] sm:$0xff] (%p942_p5), %vm2031_vm9, %v2230_v56 }
 0x6ab PF: > { %s3803_s30 = sld [smem:[#allocation9_spill]] }
 0x6b1   : > { %s38_s7 = sadd.s32 1, %s3803_s30  }
 0x6b2   : > { %p35_p6 = scmp.ge.s32.totalorder %s38_s7, 6  }
 0x6b4   :  { %37 = sbr.rel (!%p35_p6) target bundleno = 17 (0x11), region = 236 }

</bundles_post_ra>
